<compile_context>
chip_gen: v7x
topology: tpu7x:2x2x1
jax: 0.10.0
libtpu: 0.0.40
codegen_flags: <defaults>
</compile_context>

<pallas_src>
import functools

import jax
import jax.numpy as jnp
from jax.experimental import pallas as pl
from jax.experimental.pallas import tpu as pltpu


# ----------------------------------------------------------------------------
# Fused Pallas kernel: all MSGGRU layers + projection for one batch element
# ----------------------------------------------------------------------------
def _decoder_step_kernel(num_layers, x_ref, h_ref, adj_ref, *refs):
    """Fused decoder step for a single batch element (one grid step).

    x_ref   : (1, N, P)        input features for this batch element
    h_ref   : (L, 1, N, U)     previous hidden state (all layers)
    adj_ref : (N, N)
    refs    : per layer [wrx (Din,U), wrh (U,U), br (1,U),
                         wux (Din,U), wuh (U,U), bu (1,U),
                         wcx (Din,U), wch (U,U), bc (1,U)] * L,
              proj_w (U, P), proj_b (1, P),
              then outputs: out_ref (1, N, P), hid_ref (L, 1, N, U)
    """
    n_w = 9 * num_layers
    layer_refs = refs[:n_w]
    proj_w_ref, proj_b_ref = refs[n_w], refs[n_w + 1]
    out_ref, hid_ref = refs[n_w + 2], refs[n_w + 3]

    adj = adj_ref[...]                 # (N, N), VMEM-resident across the grid
    out = x_ref[0]                     # (N, Din); Din = P for layer 0

    # Layers unrolled in Python (num_layers is static and small); every
    # intermediate stays in VMEM/vregs -- no HBM traffic between layers.
    for l in range(num_layers):
        (wrx, wrh, br, wux, wuh, bu, wcx, wch, bc) = (
            r[...] for r in layer_refs[9 * l: 9 * (l + 1)])
        h = h_ref[l, 0]                # (N, U)

        # graph message passing (node-mixing matmuls -> MXU)
        m_x = jnp.dot(adj, out, preferred_element_type=jnp.float32)   # (N, Din)
        m_h = jnp.dot(adj, h, preferred_element_type=jnp.float32)     # (N, U)

        # reset / update gates with split weights (avoids lane slicing of a
        # fused (N, 2U) gate tensor at a non-128 boundary)
        r_g = jax.nn.sigmoid(
            jnp.dot(m_x, wrx, preferred_element_type=jnp.float32)
            + jnp.dot(m_h, wrh, preferred_element_type=jnp.float32)
            + br)                                                      # (N, U)
        u_g = jax.nn.sigmoid(
            jnp.dot(m_x, wux, preferred_element_type=jnp.float32)
            + jnp.dot(m_h, wuh, preferred_element_type=jnp.float32)
            + bu)                                                      # (N, U)

        m_rh = jnp.dot(adj, r_g * h, preferred_element_type=jnp.float32)  # (N, U)
        c = jnp.tanh(
            jnp.dot(m_x, wcx, preferred_element_type=jnp.float32)
            + jnp.dot(m_rh, wch, preferred_element_type=jnp.float32)
            + bc)                                                      # (N, U)

        h_new = u_g * (h - c) + c                                      # (N, U)
        hid_ref[l, 0] = h_new          # hidden state written straight out
        out = h_new

    # fused output projection: (N, U) @ (U, P) + (1, P)
    out_ref[0] = (jnp.dot(out, proj_w_ref[...],
                          preferred_element_type=jnp.float32)
                  + proj_b_ref[...])


# ----------------------------------------------------------------------------
# DecoderModel forward (single pallas_call)
# ----------------------------------------------------------------------------
def decoder_forward(params, inputs, adj, hidden_state,
                    *, num_nodes, rnn_units, output_dim):
    """
    inputs       : (B, num_nodes * output_dim)
    adj          : (num_nodes, num_nodes)
    hidden_state : (num_layers, B, num_nodes * rnn_units)
    returns (output, new_hidden_state)
      output           : (B, num_nodes * output_dim)
      new_hidden_state : (num_layers, B, num_nodes * rnn_units)
    """
    B = inputs.shape[0]
    N, U, P = num_nodes, rnn_units, output_dim
    L = len(params["msggru_layers"])

    x = inputs.reshape(B, N, P).astype(jnp.float32)
    h = hidden_state.reshape(L, B, N, U).astype(jnp.float32)
    adj = adj.astype(jnp.float32)

    def const_spec(shape):
        # Constant index map: block DMA'd into VMEM once, resident across grid.
        return pl.BlockSpec(shape, lambda b, _s=shape: (0,) * len(_s))

    weight_args, weight_specs = [], []
    for lp in params["msggru_layers"]:
        for name in ("wrx", "wrh", "br", "wux", "wuh", "bu", "wcx", "wch", "bc"):
            w = lp[name]
            weight_args.append(w)
            weight_specs.append(const_spec(w.shape))
    weight_args += [params["proj_w"], params["proj_b"]]
    weight_specs += [const_spec(params["proj_w"].shape),
                     const_spec(params["proj_b"].shape)]

    grid_spec = pltpu.PrefetchScalarGridSpec(
        num_scalar_prefetch=0,
        grid=(B,),
        in_specs=[
            pl.BlockSpec((1, N, P), lambda b: (b, 0, 0)),          # x
            pl.BlockSpec((L, 1, N, U), lambda b: (0, b, 0, 0)),    # hidden in
            const_spec((N, N)),                                    # adjacency
            *weight_specs,
        ],
        out_specs=[
            pl.BlockSpec((1, N, P), lambda b: (b, 0, 0)),          # projected
            pl.BlockSpec((L, 1, N, U), lambda b: (0, b, 0, 0)),    # hidden out
        ],
    )

    out, hid = pl.pallas_call(
        functools.partial(_decoder_step_kernel, L),
        out_shape=(jax.ShapeDtypeStruct((B, N, P), jnp.float32),
                   jax.ShapeDtypeStruct((L, B, N, U), jnp.float32)),
        grid_spec=grid_spec,
        compiler_params=pltpu.CompilerParams(
            dimension_semantics=("parallel",)),     # shards over 2 TCs on v7x
        input_output_aliases={1: 1},                # hidden state in place
    )(x, h, adj, *weight_args)

    return out.reshape(B, N * P), hid.reshape(L, B, N * U)


# ----------------------------------------------------------------------------
# Deterministic parameter construction (split reset/update gate weights)
# ----------------------------------------------------------------------------
def init_params(key, *, rnn_units, output_dim, num_rnn_layers):
    U, P = rnn_units, output_dim
    layers = []
    for layer_idx in range(num_rnn_layers):
        din = P if layer_idx == 0 else U
        key, *ks = jax.random.split(key, 10)
        scale = 1.0 / jnp.sqrt(jnp.float32(din + U))
        layers.append({
            "wrx": scale * jax.random.normal(ks[0], (din, U), jnp.float32),
            "wrh": scale * jax.random.normal(ks[1], (U, U), jnp.float32),
            "br":  0.01 * jax.random.normal(ks[2], (1, U), jnp.float32),
            "wux": scale * jax.random.normal(ks[3], (din, U), jnp.float32),
            "wuh": scale * jax.random.normal(ks[4], (U, U), jnp.float32),
            "bu":  0.01 * jax.random.normal(ks[5], (1, U), jnp.float32),
            "wcx": scale * jax.random.normal(ks[6], (din, U), jnp.float32),
            "wch": scale * jax.random.normal(ks[7], (U, U), jnp.float32),
            "bc":  0.01 * jax.random.normal(ks[8], (1, U), jnp.float32),
        })
    key, kw, kb = jax.random.split(key, 3)
    scale_p = 1.0 / jnp.sqrt(jnp.float32(U))
    return {
        "msggru_layers": layers,
        "proj_w": scale_p * jax.random.normal(kw, (U, P), jnp.float32),
        "proj_b": scale_p * jax.random.normal(kb, (1, P), jnp.float32),
    }


# ----------------------------------------------------------------------------
# Demo
# ----------------------------------------------------------------------------
if __name__ == "__main__":
    batch = 2
    num_nodes = 8
    rnn_units = 32
    output_dim = 1
    num_rnn_layers = 2

    key = jax.random.PRNGKey(0)
    key, k_in, k_h, k_adj, k_par = jax.random.split(key, 5)

    inputs = jax.random.normal(k_in, (batch, num_nodes * output_dim), jnp.float32)
    hidden_state = jax.random.normal(
        k_h, (num_rnn_layers, batch, num_nodes * rnn_units), jnp.float32)
    adj_raw = jax.random.uniform(k_adj, (num_nodes, num_nodes), jnp.float32)
    adj = adj_raw / jnp.sum(adj_raw, axis=-1, keepdims=True)  # row-normalized

    params = init_params(k_par, rnn_units=rnn_units, output_dim=output_dim,
                         num_rnn_layers=num_rnn_layers)

    fwd = jax.jit(functools.partial(
        decoder_forward, num_nodes=num_nodes, rnn_units=rnn_units,
        output_dim=output_dim))

    out, new_hidden = fwd(params, inputs, adj, hidden_state)
    jax.block_until_ready((out, new_hidden))

    assert out.shape == (batch, num_nodes * output_dim)
    assert new_hidden.shape == (num_rnn_layers, batch, num_nodes * rnn_units)
    assert bool(jnp.all(jnp.isfinite(out))) and bool(jnp.all(jnp.isfinite(new_hidden)))
    print("KERNEL_OK")
</pallas_src>

<mosaic_0001>
module attributes {stable_mosaic.version = 11 : i64} {
  func.func @_decoder_step_kernel(%arg0: i32, %arg1: memref<1x8x1xf32, #tpu.memory_space<vmem>>, %arg2: memref<2x1x8x32xf32, #tpu.memory_space<vmem>>, %arg3: memref<8x8xf32, #tpu.memory_space<vmem>>, %arg4: memref<1x32xf32, #tpu.memory_space<vmem>>, %arg5: memref<32x32xf32, #tpu.memory_space<vmem>>, %arg6: memref<1x32xf32, #tpu.memory_space<vmem>>, %arg7: memref<1x32xf32, #tpu.memory_space<vmem>>, %arg8: memref<32x32xf32, #tpu.memory_space<vmem>>, %arg9: memref<1x32xf32, #tpu.memory_space<vmem>>, %arg10: memref<1x32xf32, #tpu.memory_space<vmem>>, %arg11: memref<32x32xf32, #tpu.memory_space<vmem>>, %arg12: memref<1x32xf32, #tpu.memory_space<vmem>>, %arg13: memref<32x32xf32, #tpu.memory_space<vmem>>, %arg14: memref<32x32xf32, #tpu.memory_space<vmem>>, %arg15: memref<1x32xf32, #tpu.memory_space<vmem>>, %arg16: memref<32x32xf32, #tpu.memory_space<vmem>>, %arg17: memref<32x32xf32, #tpu.memory_space<vmem>>, %arg18: memref<1x32xf32, #tpu.memory_space<vmem>>, %arg19: memref<32x32xf32, #tpu.memory_space<vmem>>, %arg20: memref<32x32xf32, #tpu.memory_space<vmem>>, %arg21: memref<1x32xf32, #tpu.memory_space<vmem>>, %arg22: memref<32x1xf32, #tpu.memory_space<vmem>>, %arg23: memref<1x1xf32, #tpu.memory_space<vmem>>, %arg24: memref<1x8x1xf32, #tpu.memory_space<vmem>>, %arg25: memref<2x1x8x32xf32, #tpu.memory_space<vmem>>) attributes {dimension_semantics = [#tpu.dimension_semantics<parallel>], iteration_bounds = array<i64: 2>, scalar_prefetch = 0 : i64, scratch_operands = 0 : i64, tpu.core_type = #tpu.core_type<tc>, window_params = [{transform_indices = @transform_0, window_bounds = array<i64: 1, 8, 1>}, {transform_indices = @transform_1, window_bounds = array<i64: 2, 1, 8, 32>}, {pipeline_mode = #tpu.pipeline_mode<synchronous>, transform_indices = @transform_2, window_bounds = array<i64: 8, 8>}, {pipeline_mode = #tpu.pipeline_mode<synchronous>, transform_indices = @transform_3, window_bounds = array<i64: 1, 32>}, {pipeline_mode = #tpu.pipeline_mode<synchronous>, transform_indices = @transform_4, window_bounds = array<i64: 32, 32>}, {pipeline_mode = #tpu.pipeline_mode<synchronous>, transform_indices = @transform_5, window_bounds = array<i64: 1, 32>}, {pipeline_mode = #tpu.pipeline_mode<synchronous>, transform_indices = @transform_6, window_bounds = array<i64: 1, 32>}, {pipeline_mode = #tpu.pipeline_mode<synchronous>, transform_indices = @transform_7, window_bounds = array<i64: 32, 32>}, {pipeline_mode = #tpu.pipeline_mode<synchronous>, transform_indices = @transform_8, window_bounds = array<i64: 1, 32>}, {pipeline_mode = #tpu.pipeline_mode<synchronous>, transform_indices = @transform_9, window_bounds = array<i64: 1, 32>}, {pipeline_mode = #tpu.pipeline_mode<synchronous>, transform_indices = @transform_10, window_bounds = array<i64: 32, 32>}, {pipeline_mode = #tpu.pipeline_mode<synchronous>, transform_indices = @transform_11, window_bounds = array<i64: 1, 32>}, {pipeline_mode = #tpu.pipeline_mode<synchronous>, transform_indices = @transform_12, window_bounds = array<i64: 32, 32>}, {pipeline_mode = #tpu.pipeline_mode<synchronous>, transform_indices = @transform_13, window_bounds = array<i64: 32, 32>}, {pipeline_mode = #tpu.pipeline_mode<synchronous>, transform_indices = @transform_14, window_bounds = array<i64: 1, 32>}, {pipeline_mode = #tpu.pipeline_mode<synchronous>, transform_indices = @transform_15, window_bounds = array<i64: 32, 32>}, {pipeline_mode = #tpu.pipeline_mode<synchronous>, transform_indices = @transform_16, window_bounds = array<i64: 32, 32>}, {pipeline_mode = #tpu.pipeline_mode<synchronous>, transform_indices = @transform_17, window_bounds = array<i64: 1, 32>}, {pipeline_mode = #tpu.pipeline_mode<synchronous>, transform_indices = @transform_18, window_bounds = array<i64: 32, 32>}, {pipeline_mode = #tpu.pipeline_mode<synchronous>, transform_indices = @transform_19, window_bounds = array<i64: 32, 32>}, {pipeline_mode = #tpu.pipeline_mode<synchronous>, transform_indices = @transform_20, window_bounds = array<i64: 1, 32>}, {pipeline_mode = #tpu.pipeline_mode<synchronous>, transform_indices = @transform_21, window_bounds = array<i64: 32, 1>}, {pipeline_mode = #tpu.pipeline_mode<synchronous>, transform_indices = @transform_22, window_bounds = array<i64: 1, 1>}, {transform_indices = @transform_23, window_bounds = array<i64: 1, 8, 1>}, {transform_indices = @transform_24, window_bounds = array<i64: 2, 1, 8, 32>}]} {
    %c0 = arith.constant 0 : index
    %c0_0 = arith.constant 0 : index
    %0 = vector.load %arg3[%c0, %c0_0] : memref<8x8xf32, #tpu.memory_space<vmem>>, vector<8x8xf32>
    %c0_1 = arith.constant 0 : index
    %c0_2 = arith.constant 0 : index
    %c0_3 = arith.constant 0 : index
    %1 = vector.load %arg1[%c0_1, %c0_2, %c0_3] : memref<1x8x1xf32, #tpu.memory_space<vmem>>, vector<1x8x1xf32>
    %2 = vector.shape_cast %1 : vector<1x8x1xf32> to vector<8x1xf32>
    %c0_4 = arith.constant 0 : index
    %c0_5 = arith.constant 0 : index
    %3 = vector.load %arg4[%c0_4, %c0_5] : memref<1x32xf32, #tpu.memory_space<vmem>>, vector<1x32xf32>
    %c0_6 = arith.constant 0 : index
    %c0_7 = arith.constant 0 : index
    %4 = vector.load %arg5[%c0_6, %c0_7] : memref<32x32xf32, #tpu.memory_space<vmem>>, vector<32x32xf32>
    %c0_8 = arith.constant 0 : index
    %c0_9 = arith.constant 0 : index
    %5 = vector.load %arg6[%c0_8, %c0_9] : memref<1x32xf32, #tpu.memory_space<vmem>>, vector<1x32xf32>
    %c0_10 = arith.constant 0 : index
    %c0_11 = arith.constant 0 : index
    %6 = vector.load %arg7[%c0_10, %c0_11] : memref<1x32xf32, #tpu.memory_space<vmem>>, vector<1x32xf32>
    %c0_12 = arith.constant 0 : index
    %c0_13 = arith.constant 0 : index
    %7 = vector.load %arg8[%c0_12, %c0_13] : memref<32x32xf32, #tpu.memory_space<vmem>>, vector<32x32xf32>
    %c0_14 = arith.constant 0 : index
    %c0_15 = arith.constant 0 : index
    %8 = vector.load %arg9[%c0_14, %c0_15] : memref<1x32xf32, #tpu.memory_space<vmem>>, vector<1x32xf32>
    %c0_16 = arith.constant 0 : index
    %c0_17 = arith.constant 0 : index
    %9 = vector.load %arg10[%c0_16, %c0_17] : memref<1x32xf32, #tpu.memory_space<vmem>>, vector<1x32xf32>
    %c0_18 = arith.constant 0 : index
    %c0_19 = arith.constant 0 : index
    %10 = vector.load %arg11[%c0_18, %c0_19] : memref<32x32xf32, #tpu.memory_space<vmem>>, vector<32x32xf32>
    %c0_20 = arith.constant 0 : index
    %c0_21 = arith.constant 0 : index
    %11 = vector.load %arg12[%c0_20, %c0_21] : memref<1x32xf32, #tpu.memory_space<vmem>>, vector<1x32xf32>
    %c0_22 = arith.constant 0 : index
    %c0_23 = arith.constant 0 : index
    %c0_24 = arith.constant 0 : index
    %c0_25 = arith.constant 0 : index
    %12 = vector.load %arg2[%c0_22, %c0_23, %c0_24, %c0_25] : memref<2x1x8x32xf32, #tpu.memory_space<vmem>>, vector<1x1x8x32xf32>
    %13 = vector.shape_cast %12 : vector<1x1x8x32xf32> to vector<8x32xf32>
    %cst = arith.constant dense<0.000000e+00> : vector<8x1xf32>
    %14 = tpu.matmul %0, %2, %cst {dimension_numbers = #tpu.dot_dimension_numbers<[1], [0], [0], [1], [0, 0, 1, 1], [], []>} : vector<8x8xf32>, vector<8x1xf32>, vector<8x1xf32> -> vector<8x1xf32>
    %cst_26 = arith.constant dense<0.000000e+00> : vector<8x32xf32>
    %15 = tpu.matmul %0, %13, %cst_26 {dimension_numbers = #tpu.dot_dimension_numbers<[1], [0], [0], [1], [0, 0, 1, 1], [], []>} : vector<8x8xf32>, vector<8x32xf32>, vector<8x32xf32> -> vector<8x32xf32>
    %cst_27 = arith.constant dense<0.000000e+00> : vector<8x32xf32>
    %16 = tpu.matmul %14, %3, %cst_27 {dimension_numbers = #tpu.dot_dimension_numbers<[1], [0], [0], [1], [0, 0, 1, 1], [], []>} : vector<8x1xf32>, vector<1x32xf32>, vector<8x32xf32> -> vector<8x32xf32>
    %cst_28 = arith.constant dense<0.000000e+00> : vector<8x32xf32>
    %17 = tpu.matmul %15, %4, %cst_28 {dimension_numbers = #tpu.dot_dimension_numbers<[1], [0], [0], [1], [0, 0, 1, 1], [], []>} : vector<8x32xf32>, vector<32x32xf32>, vector<8x32xf32> -> vector<8x32xf32>
    %18 = arith.addf %16, %17 : vector<8x32xf32>
    %19 = vector.broadcast %5 : vector<1x32xf32> to vector<8x32xf32>
    %20 = arith.addf %18, %19 : vector<8x32xf32>
    %21 = arith.negf %20 : vector<8x32xf32>
    %22 = math.exp %21 : vector<8x32xf32>
    %cst_29 = arith.constant 1.000000e+00 : f32
    %23 = vector.broadcast %cst_29 : f32 to vector<8x32xf32>
    %24 = arith.addf %23, %22 : vector<8x32xf32>
    %25 = arith.divf %23, %24 : vector<8x32xf32>
    %cst_30 = arith.constant dense<0.000000e+00> : vector<8x32xf32>
    %26 = tpu.matmul %14, %6, %cst_30 {dimension_numbers = #tpu.dot_dimension_numbers<[1], [0], [0], [1], [0, 0, 1, 1], [], []>} : vector<8x1xf32>, vector<1x32xf32>, vector<8x32xf32> -> vector<8x32xf32>
    %cst_31 = arith.constant dense<0.000000e+00> : vector<8x32xf32>
    %27 = tpu.matmul %15, %7, %cst_31 {dimension_numbers = #tpu.dot_dimension_numbers<[1], [0], [0], [1], [0, 0, 1, 1], [], []>} : vector<8x32xf32>, vector<32x32xf32>, vector<8x32xf32> -> vector<8x32xf32>
    %28 = arith.addf %26, %27 : vector<8x32xf32>
    %29 = vector.broadcast %8 : vector<1x32xf32> to vector<8x32xf32>
    %30 = arith.addf %28, %29 : vector<8x32xf32>
    %31 = arith.negf %30 : vector<8x32xf32>
    %32 = math.exp %31 : vector<8x32xf32>
    %cst_32 = arith.constant 1.000000e+00 : f32
    %33 = vector.broadcast %cst_32 : f32 to vector<8x32xf32>
    %34 = arith.addf %33, %32 : vector<8x32xf32>
    %35 = arith.divf %33, %34 : vector<8x32xf32>
    %36 = arith.mulf %25, %13 : vector<8x32xf32>
    %cst_33 = arith.constant dense<0.000000e+00> : vector<8x32xf32>
    %37 = tpu.matmul %0, %36, %cst_33 {dimension_numbers = #tpu.dot_dimension_numbers<[1], [0], [0], [1], [0, 0, 1, 1], [], []>} : vector<8x8xf32>, vector<8x32xf32>, vector<8x32xf32> -> vector<8x32xf32>
    %cst_34 = arith.constant dense<0.000000e+00> : vector<8x32xf32>
    %38 = tpu.matmul %14, %9, %cst_34 {dimension_numbers = #tpu.dot_dimension_numbers<[1], [0], [0], [1], [0, 0, 1, 1], [], []>} : vector<8x1xf32>, vector<1x32xf32>, vector<8x32xf32> -> vector<8x32xf32>
    %cst_35 = arith.constant dense<0.000000e+00> : vector<8x32xf32>
    %39 = tpu.matmul %37, %10, %cst_35 {dimension_numbers = #tpu.dot_dimension_numbers<[1], [0], [0], [1], [0, 0, 1, 1], [], []>} : vector<8x32xf32>, vector<32x32xf32>, vector<8x32xf32> -> vector<8x32xf32>
    %40 = arith.addf %38, %39 : vector<8x32xf32>
    %41 = vector.broadcast %11 : vector<1x32xf32> to vector<8x32xf32>
    %42 = arith.addf %40, %41 : vector<8x32xf32>
    %43 = math.tanh %42 : vector<8x32xf32>
    %44 = arith.subf %13, %43 : vector<8x32xf32>
    %45 = arith.mulf %35, %44 : vector<8x32xf32>
    %46 = arith.addf %45, %43 : vector<8x32xf32>
    %c0_36 = arith.constant 0 : index
    %c0_37 = arith.constant 0 : index
    %c0_38 = arith.constant 0 : index
    %c0_39 = arith.constant 0 : index
    %47 = vector.load %arg25[%c0_36, %c0_37, %c0_38, %c0_39] : memref<2x1x8x32xf32, #tpu.memory_space<vmem>>, vector<1x1x8x32xf32>
    %48 = vector.shape_cast %47 : vector<1x1x8x32xf32> to vector<8x32xf32>
    %49 = vector.shape_cast %46 : vector<8x32xf32> to vector<1x1x8x32xf32>
    tpu.vector_store %arg25[%c0_36, %c0_37, %c0_38, %c0_39], %49 {strides = array<i32>} : memref<2x1x8x32xf32, #tpu.memory_space<vmem>>, vector<1x1x8x32xf32>,
    %c0_40 = arith.constant 0 : index
    %c0_41 = arith.constant 0 : index
    %50 = vector.load %arg13[%c0_40, %c0_41] : memref<32x32xf32, #tpu.memory_space<vmem>>, vector<32x32xf32>
    %c0_42 = arith.constant 0 : index
    %c0_43 = arith.constant 0 : index
    %51 = vector.load %arg14[%c0_42, %c0_43] : memref<32x32xf32, #tpu.memory_space<vmem>>, vector<32x32xf32>
    %c0_44 = arith.constant 0 : index
    %c0_45 = arith.constant 0 : index
    %52 = vector.load %arg15[%c0_44, %c0_45] : memref<1x32xf32, #tpu.memory_space<vmem>>, vector<1x32xf32>
    %c0_46 = arith.constant 0 : index
    %c0_47 = arith.constant 0 : index
    %53 = vector.load %arg16[%c0_46, %c0_47] : memref<32x32xf32, #tpu.memory_space<vmem>>, vector<32x32xf32>
    %c0_48 = arith.constant 0 : index
    %c0_49 = arith.constant 0 : index
    %54 = vector.load %arg17[%c0_48, %c0_49] : memref<32x32xf32, #tpu.memory_space<vmem>>, vector<32x32xf32>
    %c0_50 = arith.constant 0 : index
    %c0_51 = arith.constant 0 : index
    %55 = vector.load %arg18[%c0_50, %c0_51] : memref<1x32xf32, #tpu.memory_space<vmem>>, vector<1x32xf32>
    %c0_52 = arith.constant 0 : index
    %c0_53 = arith.constant 0 : index
    %56 = vector.load %arg19[%c0_52, %c0_53] : memref<32x32xf32, #tpu.memory_space<vmem>>, vector<32x32xf32>
    %c0_54 = arith.constant 0 : index
    %c0_55 = arith.constant 0 : index
    %57 = vector.load %arg20[%c0_54, %c0_55] : memref<32x32xf32, #tpu.memory_space<vmem>>, vector<32x32xf32>
    %c0_56 = arith.constant 0 : index
    %c0_57 = arith.constant 0 : index
    %58 = vector.load %arg21[%c0_56, %c0_57] : memref<1x32xf32, #tpu.memory_space<vmem>>, vector<1x32xf32>
    %c1 = arith.constant 1 : index
    %c0_58 = arith.constant 0 : index
    %c0_59 = arith.constant 0 : index
    %c0_60 = arith.constant 0 : index
    %59 = vector.load %arg2[%c1, %c0_58, %c0_59, %c0_60] : memref<2x1x8x32xf32, #tpu.memory_space<vmem>>, vector<1x1x8x32xf32>
    %60 = vector.shape_cast %59 : vector<1x1x8x32xf32> to vector<8x32xf32>
    %cst_61 = arith.constant dense<0.000000e+00> : vector<8x32xf32>
    %61 = tpu.matmul %0, %46, %cst_61 {dimension_numbers = #tpu.dot_dimension_numbers<[1], [0], [0], [1], [0, 0, 1, 1], [], []>} : vector<8x8xf32>, vector<8x32xf32>, vector<8x32xf32> -> vector<8x32xf32>
    %cst_62 = arith.constant dense<0.000000e+00> : vector<8x32xf32>
    %62 = tpu.matmul %0, %60, %cst_62 {dimension_numbers = #tpu.dot_dimension_numbers<[1], [0], [0], [1], [0, 0, 1, 1], [], []>} : vector<8x8xf32>, vector<8x32xf32>, vector<8x32xf32> -> vector<8x32xf32>
    %cst_63 = arith.constant dense<0.000000e+00> : vector<8x32xf32>
    %63 = tpu.matmul %61, %50, %cst_63 {dimension_numbers = #tpu.dot_dimension_numbers<[1], [0], [0], [1], [0, 0, 1, 1], [], []>} : vector<8x32xf32>, vector<32x32xf32>, vector<8x32xf32> -> vector<8x32xf32>
    %cst_64 = arith.constant dense<0.000000e+00> : vector<8x32xf32>
    %64 = tpu.matmul %62, %51, %cst_64 {dimension_numbers = #tpu.dot_dimension_numbers<[1], [0], [0], [1], [0, 0, 1, 1], [], []>} : vector<8x32xf32>, vector<32x32xf32>, vector<8x32xf32> -> vector<8x32xf32>
    %65 = arith.addf %63, %64 : vector<8x32xf32>
    %66 = vector.broadcast %52 : vector<1x32xf32> to vector<8x32xf32>
    %67 = arith.addf %65, %66 : vector<8x32xf32>
    %68 = arith.negf %67 : vector<8x32xf32>
    %69 = math.exp %68 : vector<8x32xf32>
    %cst_65 = arith.constant 1.000000e+00 : f32
    %70 = vector.broadcast %cst_65 : f32 to vector<8x32xf32>
    %71 = arith.addf %70, %69 : vector<8x32xf32>
    %72 = arith.divf %70, %71 : vector<8x32xf32>
    %cst_66 = arith.constant dense<0.000000e+00> : vector<8x32xf32>
    %73 = tpu.matmul %61, %53, %cst_66 {dimension_numbers = #tpu.dot_dimension_numbers<[1], [0], [0], [1], [0, 0, 1, 1], [], []>} : vector<8x32xf32>, vector<32x32xf32>, vector<8x32xf32> -> vector<8x32xf32>
    %cst_67 = arith.constant dense<0.000000e+00> : vector<8x32xf32>
    %74 = tpu.matmul %62, %54, %cst_67 {dimension_numbers = #tpu.dot_dimension_numbers<[1], [0], [0], [1], [0, 0, 1, 1], [], []>} : vector<8x32xf32>, vector<32x32xf32>, vector<8x32xf32> -> vector<8x32xf32>
    %75 = arith.addf %73, %74 : vector<8x32xf32>
    %76 = vector.broadcast %55 : vector<1x32xf32> to vector<8x32xf32>
    %77 = arith.addf %75, %76 : vector<8x32xf32>
    %78 = arith.negf %77 : vector<8x32xf32>
    %79 = math.exp %78 : vector<8x32xf32>
    %cst_68 = arith.constant 1.000000e+00 : f32
    %80 = vector.broadcast %cst_68 : f32 to vector<8x32xf32>
    %81 = arith.addf %80, %79 : vector<8x32xf32>
    %82 = arith.divf %80, %81 : vector<8x32xf32>
    %83 = arith.mulf %72, %60 : vector<8x32xf32>
    %cst_69 = arith.constant dense<0.000000e+00> : vector<8x32xf32>
    %84 = tpu.matmul %0, %83, %cst_69 {dimension_numbers = #tpu.dot_dimension_numbers<[1], [0], [0], [1], [0, 0, 1, 1], [], []>} : vector<8x8xf32>, vector<8x32xf32>, vector<8x32xf32> -> vector<8x32xf32>
    %cst_70 = arith.constant dense<0.000000e+00> : vector<8x32xf32>
    %85 = tpu.matmul %61, %56, %cst_70 {dimension_numbers = #tpu.dot_dimension_numbers<[1], [0], [0], [1], [0, 0, 1, 1], [], []>} : vector<8x32xf32>, vector<32x32xf32>, vector<8x32xf32> -> vector<8x32xf32>
    %cst_71 = arith.constant dense<0.000000e+00> : vector<8x32xf32>
    %86 = tpu.matmul %84, %57, %cst_71 {dimension_numbers = #tpu.dot_dimension_numbers<[1], [0], [0], [1], [0, 0, 1, 1], [], []>} : vector<8x32xf32>, vector<32x32xf32>, vector<8x32xf32> -> vector<8x32xf32>
    %87 = arith.addf %85, %86 : vector<8x32xf32>
    %88 = vector.broadcast %58 : vector<1x32xf32> to vector<8x32xf32>
    %89 = arith.addf %87, %88 : vector<8x32xf32>
    %90 = math.tanh %89 : vector<8x32xf32>
    %91 = arith.subf %60, %90 : vector<8x32xf32>
    %92 = arith.mulf %82, %91 : vector<8x32xf32>
    %93 = arith.addf %92, %90 : vector<8x32xf32>
    %c1_72 = arith.constant 1 : index
    %c0_73 = arith.constant 0 : index
    %c0_74 = arith.constant 0 : index
    %c0_75 = arith.constant 0 : index
    %94 = vector.load %arg25[%c1_72, %c0_73, %c0_74, %c0_75] : memref<2x1x8x32xf32, #tpu.memory_space<vmem>>, vector<1x1x8x32xf32>
    %95 = vector.shape_cast %94 : vector<1x1x8x32xf32> to vector<8x32xf32>
    %96 = vector.shape_cast %93 : vector<8x32xf32> to vector<1x1x8x32xf32>
    tpu.vector_store %arg25[%c1_72, %c0_73, %c0_74, %c0_75], %96 {strides = array<i32>} : memref<2x1x8x32xf32, #tpu.memory_space<vmem>>, vector<1x1x8x32xf32>,
    %c0_76 = arith.constant 0 : index
    %c0_77 = arith.constant 0 : index
    %97 = vector.load %arg22[%c0_76, %c0_77] : memref<32x1xf32, #tpu.memory_space<vmem>>, vector<32x1xf32>
    %cst_78 = arith.constant dense<0.000000e+00> : vector<8x1xf32>
    %98 = tpu.matmul %93, %97, %cst_78 {dimension_numbers = #tpu.dot_dimension_numbers<[1], [0], [0], [1], [0, 0, 1, 1], [], []>} : vector<8x32xf32>, vector<32x1xf32>, vector<8x1xf32> -> vector<8x1xf32>
    %c0_79 = arith.constant 0 : index
    %c0_80 = arith.constant 0 : index
    %99 = vector.load %arg23[%c0_79, %c0_80] : memref<1x1xf32, #tpu.memory_space<vmem>>, vector<1x1xf32>
    %100 = vector.broadcast %99 : vector<1x1xf32> to vector<8x1xf32>
    %101 = arith.addf %98, %100 : vector<8x1xf32>
    %c0_81 = arith.constant 0 : index
    %c0_82 = arith.constant 0 : index
    %c0_83 = arith.constant 0 : index
    %102 = vector.load %arg24[%c0_81, %c0_82, %c0_83] : memref<1x8x1xf32, #tpu.memory_space<vmem>>, vector<1x8x1xf32>
    %103 = vector.shape_cast %102 : vector<1x8x1xf32> to vector<8x1xf32>
    %104 = vector.shape_cast %101 : vector<8x1xf32> to vector<1x8x1xf32>
    tpu.vector_store %arg24[%c0_81, %c0_82, %c0_83], %104 {strides = array<i32>} : memref<1x8x1xf32, #tpu.memory_space<vmem>>, vector<1x8x1xf32>,
    return
  }
  func.func @transform_0(%arg0: i32) -> (i32, i32, i32) {
    %c0_i32 = arith.constant 0 : i32
    %c0_i32_0 = arith.constant 0 : i32
    %c0_i32_1 = arith.constant 0 : i32
    return %arg0, %c0_i32, %c0_i32_0 : i32, i32, i32
  }
  func.func @transform_1(%arg0: i32) -> (i32, i32, i32, i32) {
    %c0_i32 = arith.constant 0 : i32
    %c0_i32_0 = arith.constant 0 : i32
    %c0_i32_1 = arith.constant 0 : i32
    %c0_i32_2 = arith.constant 0 : i32
    return %c0_i32, %arg0, %c0_i32_0, %c0_i32_1 : i32, i32, i32, i32
  }
  func.func @transform_2(%arg0: i32) -> (i32, i32) {
    %c0_i32 = arith.constant 0 : i32
    %c0_i32_0 = arith.constant 0 : i32
    %c0_i32_1 = arith.constant 0 : i32
    return %c0_i32, %c0_i32_0 : i32, i32
  }
  func.func @transform_3(%arg0: i32) -> (i32, i32) {
    %c0_i32 = arith.constant 0 : i32
    %c0_i32_0 = arith.constant 0 : i32
    %c0_i32_1 = arith.constant 0 : i32
    return %c0_i32, %c0_i32_0 : i32, i32
  }
  func.func @transform_4(%arg0: i32) -> (i32, i32) {
    %c0_i32 = arith.constant 0 : i32
    %c0_i32_0 = arith.constant 0 : i32
    %c0_i32_1 = arith.constant 0 : i32
    return %c0_i32, %c0_i32_0 : i32, i32
  }
  func.func @transform_5(%arg0: i32) -> (i32, i32) {
    %c0_i32 = arith.constant 0 : i32
    %c0_i32_0 = arith.constant 0 : i32
    %c0_i32_1 = arith.constant 0 : i32
    return %c0_i32, %c0_i32_0 : i32, i32
  }
  func.func @transform_6(%arg0: i32) -> (i32, i32) {
    %c0_i32 = arith.constant 0 : i32
    %c0_i32_0 = arith.constant 0 : i32
    %c0_i32_1 = arith.constant 0 : i32
    return %c0_i32, %c0_i32_0 : i32, i32
  }
  func.func @transform_7(%arg0: i32) -> (i32, i32) {
    %c0_i32 = arith.constant 0 : i32
    %c0_i32_0 = arith.constant 0 : i32
    %c0_i32_1 = arith.constant 0 : i32
    return %c0_i32, %c0_i32_0 : i32, i32
  }
  func.func @transform_8(%arg0: i32) -> (i32, i32) {
    %c0_i32 = arith.constant 0 : i32
    %c0_i32_0 = arith.constant 0 : i32
    %c0_i32_1 = arith.constant 0 : i32
    return %c0_i32, %c0_i32_0 : i32, i32
  }
  func.func @transform_9(%arg0: i32) -> (i32, i32) {
    %c0_i32 = arith.constant 0 : i32
    %c0_i32_0 = arith.constant 0 : i32
    %c0_i32_1 = arith.constant 0 : i32
    return %c0_i32, %c0_i32_0 : i32, i32
  }
  func.func @transform_10(%arg0: i32) -> (i32, i32) {
    %c0_i32 = arith.constant 0 : i32
    %c0_i32_0 = arith.constant 0 : i32
    %c0_i32_1 = arith.constant 0 : i32
    return %c0_i32, %c0_i32_0 : i32, i32
  }
  func.func @transform_11(%arg0: i32) -> (i32, i32) {
    %c0_i32 = arith.constant 0 : i32
    %c0_i32_0 = arith.constant 0 : i32
    %c0_i32_1 = arith.constant 0 : i32
    return %c0_i32, %c0_i32_0 : i32, i32
  }
  func.func @transform_12(%arg0: i32) -> (i32, i32) {
    %c0_i32 = arith.constant 0 : i32
    %c0_i32_0 = arith.constant 0 : i32
    %c0_i32_1 = arith.constant 0 : i32
    return %c0_i32, %c0_i32_0 : i32, i32
  }
  func.func @transform_13(%arg0: i32) -> (i32, i32) {
    %c0_i32 = arith.constant 0 : i32
    %c0_i32_0 = arith.constant 0 : i32
    %c0_i32_1 = arith.constant 0 : i32
    return %c0_i32, %c0_i32_0 : i32, i32
  }
  func.func @transform_14(%arg0: i32) -> (i32, i32) {
    %c0_i32 = arith.constant 0 : i32
    %c0_i32_0 = arith.constant 0 : i32
    %c0_i32_1 = arith.constant 0 : i32
    return %c0_i32, %c0_i32_0 : i32, i32
  }
  func.func @transform_15(%arg0: i32) -> (i32, i32) {
    %c0_i32 = arith.constant 0 : i32
    %c0_i32_0 = arith.constant 0 : i32
    %c0_i32_1 = arith.constant 0 : i32
    return %c0_i32, %c0_i32_0 : i32, i32
  }
  func.func @transform_16(%arg0: i32) -> (i32, i32) {
    %c0_i32 = arith.constant 0 : i32
    %c0_i32_0 = arith.constant 0 : i32
    %c0_i32_1 = arith.constant 0 : i32
    return %c0_i32, %c0_i32_0 : i32, i32
  }
  func.func @transform_17(%arg0: i32) -> (i32, i32) {
    %c0_i32 = arith.constant 0 : i32
    %c0_i32_0 = arith.constant 0 : i32
    %c0_i32_1 = arith.constant 0 : i32
    return %c0_i32, %c0_i32_0 : i32, i32
  }
  func.func @transform_18(%arg0: i32) -> (i32, i32) {
    %c0_i32 = arith.constant 0 : i32
    %c0_i32_0 = arith.constant 0 : i32
    %c0_i32_1 = arith.constant 0 : i32
    return %c0_i32, %c0_i32_0 : i32, i32
  }
  func.func @transform_19(%arg0: i32) -> (i32, i32) {
    %c0_i32 = arith.constant 0 : i32
    %c0_i32_0 = arith.constant 0 : i32
    %c0_i32_1 = arith.constant 0 : i32
    return %c0_i32, %c0_i32_0 : i32, i32
  }
  func.func @transform_20(%arg0: i32) -> (i32, i32) {
    %c0_i32 = arith.constant 0 : i32
    %c0_i32_0 = arith.constant 0 : i32
    %c0_i32_1 = arith.constant 0 : i32
    return %c0_i32, %c0_i32_0 : i32, i32
  }
  func.func @transform_21(%arg0: i32) -> (i32, i32) {
    %c0_i32 = arith.constant 0 : i32
    %c0_i32_0 = arith.constant 0 : i32
    %c0_i32_1 = arith.constant 0 : i32
    return %c0_i32, %c0_i32_0 : i32, i32
  }
  func.func @transform_22(%arg0: i32) -> (i32, i32) {
    %c0_i32 = arith.constant 0 : i32
    %c0_i32_0 = arith.constant 0 : i32
    %c0_i32_1 = arith.constant 0 : i32
    return %c0_i32, %c0_i32_0 : i32, i32
  }
  func.func @transform_23(%arg0: i32) -> (i32, i32, i32) {
    %c0_i32 = arith.constant 0 : i32
    %c0_i32_0 = arith.constant 0 : i32
    %c0_i32_1 = arith.constant 0 : i32
    return %arg0, %c0_i32, %c0_i32_0 : i32, i32, i32
  }
  func.func @transform_24(%arg0: i32) -> (i32, i32, i32, i32) {
    %c0_i32 = arith.constant 0 : i32
    %c0_i32_0 = arith.constant 0 : i32
    %c0_i32_1 = arith.constant 0 : i32
    %c0_i32_2 = arith.constant 0 : i32
    return %c0_i32, %arg0, %c0_i32_0, %c0_i32_1 : i32, i32, i32, i32
  }
}

</mosaic_0001>

<bundles_post_ra>
// kernel: decoder_forward.1
= control target key start
LH: loop header
LB: loop body
LE: loop exit
PB: predicated region body
PF: predicated region fallthrough
CT: control target
= control target key end

     0   :  { %s4567_s0 = inlined_call_operand.vmem [shape: f32[2,8,1], index: 0, kind: input, shape index: {}]   ;;  %s4568_s1 = inlined_call_operand.vmem [shape: f32[2,2,8,32], index: 1, kind: input, shape index: {}, may-alias: {1,24}]   ;;  %s4569_s2 = inlined_call_operand.hbm [shape: f32[8,8], index: 2, kind: input, shape index: {}]   ;;  %s4570_s3 = inlined_call_operand.hbm [shape: f32[1,32], index: 3, kind: input, shape index: {}]   ;;  %s4571_s4 = inlined_call_operand.vmem [shape: f32[32,32], index: 4, kind: input, shape index: {}]   ;;  %s4572_s5 = inlined_call_operand.hbm [shape: f32[1,32], index: 5, kind: input, shape index: {}]   ;;  %s4573_s6 = inlined_call_operand.hbm [shape: f32[1,32], index: 6, kind: input, shape index: {}]   ;;  %s4574_s7 = inlined_call_operand.vmem [shape: f32[32,32], index: 7, kind: input, shape index: {}]   ;;  %s4575_s8 = inlined_call_operand.hbm [shape: f32[1,32], index: 8, kind: input, shape index: {}]   ;;  %s4576_s9 = inlined_call_operand.hbm [shape: f32[1,32], index: 9, kind: input, shape index: {}]   ;;  %s4577_s10 = inlined_call_operand.vmem [shape: f32[32,32], index: 10, kind: input, shape index: {}]   ;;  %s4578_s11 = inlined_call_operand.hbm [shape: f32[1,32], index: 11, kind: input, shape index: {}]   ;;  %s4579_s12 = inlined_call_operand.vmem [shape: f32[32,32], index: 12, kind: input, shape index: {}]   ;;  %s4580_s13 = inlined_call_operand.hbm [shape: f32[32,32], index: 13, kind: input, shape index: {}]   ;;  %s4581_s14 = inlined_call_operand.hbm [shape: f32[1,32], index: 14, kind: input, shape index: {}]   ;;  %s4582_s15 = inlined_call_operand.vmem [shape: f32[32,32], index: 15, kind: input, shape index: {}]   ;;  %s4583_s16 = inlined_call_operand.hbm [shape: f32[32,32], index: 16, kind: input, shape index: {}]   ;;  %s4584_s17 = inlined_call_operand.hbm [shape: f32[1,32], index: 17, kind: input, shape index: {}]   ;;  %s4585_s18 = inlined_call_operand.hbm [shape: f32[32,32], index: 18, kind: input, shape index: {}]   ;;  %s4586_s19 = inlined_call_operand.hbm [shape: f32[32,32], index: 19, kind: input, shape index: {}]   ;;  %s4587_s20 = inlined_call_operand.hbm [shape: f32[1,32], index: 20, kind: input, shape index: {}]   ;;  %s4588_s21 = inlined_call_operand.vmem [shape: f32[32,1], index: 21, kind: input, shape index: {}]   ;;  %s4589_s22 = inlined_call_operand.<no memory space> [shape: f32[1,1], index: 22, kind: input, shape index: {}]   ;;  %s4590_s23 = inlined_call_operand.vmem [shape: f32[2,8,1], index: 23, kind: output, shape index: {0}]   ;;  %s4591_s24 = inlined_call_operand.vmem [shape: f32[2,2,8,32], index: 24, kind: output, shape index: {1}, may-alias: {1,24}]  }
   0x1   :  { %4612 = sst [smem:[#allocation38_spill]] %s4567_s0  ;;  %v30_v0 = vstv %s4589_s22 }
   0x2   :  { %4613 = sst [smem:[#allocation39_spill]] %s4568_s1  ;;  %31 = vst [vmem:[#allocation2] sm:$0x1] %v30_v0 }
   0x3   :  { %4614 = sst [smem:[#allocation40_spill]] %s4569_s2 }
   0x4   :  { %4615 = sst [smem:[#allocation41_spill]] %s4570_s3 }
   0x5   :  { %4616 = sst [smem:[#allocation42_spill]] %s4571_s4 }
   0x6   :  { %4617 = sst [smem:[#allocation43_spill]] %s4572_s5 }
   0x7   :  { %4618 = sst [smem:[#allocation44_spill]] %s4573_s6 }
   0x8   :  { %4619 = sst [smem:[#allocation45_spill]] %s4574_s7 }
   0x9   :  { %4620 = sst [smem:[#allocation46_spill]] %s4575_s8 }
   0xa   :  { %4621 = sst [smem:[#allocation47_spill]] %s4576_s9 }
   0xb   :  { %4622 = sst [smem:[#allocation48_spill]] %s4577_s10 }
   0xc   :  { %4623 = sst [smem:[#allocation49_spill]] %s4579_s12 }
   0xd   :  { %4624 = sst [smem:[#allocation50_spill]] %s4580_s13 }
   0xe   :  { %4625 = sst [smem:[#allocation51_spill]] %s4582_s15 }
   0xf   :  { %4626 = sst [smem:[#allocation52_spill]] %s4588_s21 }
  0x10   :  { %4627 = sst [smem:[#allocation53_spill]] %s4590_s23 }
  0x11   :  { %4628 = sst [smem:[#allocation54_spill]] %s4591_s24 }
  0x12   :  { %32 = vsyncpa [#allocation5], 0 }
  0x13   :  { %33 = vsyncpa [#allocation7], 0 }
  0x14   :  { %34 = vsyncpa [#allocation10], 0 }
  0x15   :  { %35 = vsyncpa [#allocation13], 0 }
  0x16   :  { %36 = vsyncpa [#allocation16], 0 }
  0x17   :  { %37 = vsyncpa [#allocation19], 0 }
  0x18   :  { %38 = vsyncpa [#allocation22], 0 }
  0x19   :  { %39 = vsyncpa [#allocation25], 0  ;;  %s3918_s27 = smov 0   ;;  %s3920_s28 = smov 0  }
  0x1a   :  { %s3922_s6 = smov 0  }
  0x1b LB: > { %s3934_s22 = sadd.s32 4294967295, %s3769_s6   ;;  %s3937_s2 = sadd.s32 1, %s3769_s6   ;;  %s3769_s6 = sphi %s3922_s6, %s4675_s6   ;;  %s3765_s28 = sphi %s3920_s28, %s4678_s28   ;;  %s3761_s27 = sphi %s3918_s27, %s4677_s27  }
  0x1c   : > { %4629 = sst [smem:[#allocation35_spill]] %s3937_s2  ;;  %s75_s29 = ssub.s32 %s3769_s6, %s3937_s2 }
  0x1d   : > { %s78_s0 = sadd.s32 1, %s3765_s28  ;;  %p76_p0 = scmp.eq.s32.totalorder %s75_s29, 0 }
  0x1e   : > { %p85_p1 = scmp.ne.s32.totalorder %s3765_s28, %s3761_s27  ;;  %p86_p2 = scmp.eq.s32.totalorder %s3769_s6, 0 }
  0x1f   : > { %p582_p3 = scmp.eq.s32.totalorder %s3934_s22, 1  ;;  %p2774_p6 = scmp.ge.s32.totalorder %s3769_s6, 1 }
  0x20   : > { %s3947_s7 = scalar_select %p76_p0, %s3765_s28, %s78_s0  }
  0x21   : > { %p3949_p4 = por %p86_p2, %p85_p1  ;;  %p3953_p5 = por %p582_p3, %p85_p1 }
  0x22   : > { %4630 = sst [smem:[#allocation36_spill]] %s3947_s7  ;;  %p595_p7 = scmp.lt.s32.totalorder %s3769_s6, 3 }
  0x23   : > { %s4631_s30 = scalar_select %p3949_p4, 1, 0 }
  0x24   : > { %s4632_s3 = scalar_select %p3953_p5, 1, 0 }
  0x25   : > { %p4603_p8 = scmp.eq.s32.totalorder %s3934_s22, 0  ;;  %p3960_p9 = pnand %p2774_p6, %p595_p7 }
  0x26   : > { %4633 = sst [smem:[#allocation37_spill]] %s4632_s3  ;;  %s3771_s8 = smov [#allocation6]  }
  0x27   : > { %s4634_s25 = scalar_select %p3960_p9, 1, 0 }
  0x28   : > { %s619_s4 = sshll.u32 %s3771_s8, 4  ;;  %p3189_p10 = pneg %p3960_p9  ;;  %s620_s4 = int_to_ptr.vmem [resolvable:$true] %s619_s4 }
  0x29   : > { %s3772_s1 = smov [#allocation9]   ;;  %s3773_s29 = smov [#allocation12]  }
  0x2a   : > { %s644_s5 = sshll.u32 %s3772_s1, 4  ;;  %p3968_p11 = pnand %p4603_p8, %p3189_p10  ;;  %s3972_s5 = int_to_ptr.vmem [resolvable:$true] %s644_s5 }
  0x2b   : > { %s669_s0 = sshll.u32 %s3773_s29, 4  ;;  %s4636_s8 = sld [smem:[#allocation41_spill]]  ;;  %s3974_s0 = int_to_ptr.vmem [resolvable:$true] %s669_s0 }
  0x2c   : > { %p3984_p13 = pneg %p3968_p11 }
  0x31   : > { %s3323_s24 = scalar_lea.hbm %s4636_s8, 16 }
  0x32   : > { %p3324_p12 = scmp.ne.s32.totalorder %s4636_s8, %s3323_s24  ;;  %p3330_p2 = scmp.lt.u32.totalorder %s3323_s24, %s4636_s8 }
  0x34   : > { %p3326_p0 = pnand %p3984_p13, %p3324_p12 }
  0x36   : > { %p3327_p1 = pneg %p3326_p0 }
  0x38   : > { %p3332_p3 = pnand %p3330_p2, %p3327_p1 }
  0x3a   : > { %3335 = shalt.err (!%p3332_p3)
}
  0x3b   : > { %s3336_s2 = scalar_lea.vmem %s620_s4, 16  ;;  %s3343_s23 = scalar_lea.vmem %s620_s4, 32 }
  0x3c   : > { %p3337_p6 = scmp.ne.s32.totalorder %s620_s4, %s3336_s2  ;;  %p3344_p8 = scmp.lt.s32.totalorder %s620_s4, %s620_s4 }
  0x3d   : > { %p3345_p5 = scmp.lt.s32.totalorder %s3343_s23, %s3336_s2 }
  0x3e   : > { %p3339_p7 = pnand %p3337_p6, %p3984_p13 }
  0x3f   : > { %p3346_p9 = por %p3345_p5, %p3344_p8 }
  0x40   : > { %p3340_p10 = pneg %p3339_p7 }
  0x42   : > { %p3347_p4 = pnand %p3346_p9, %p3340_p10 }
  0x44   : > { %3350 = shalt.err (!%p3347_p4)
}
  0x45   : > { %3195 = dma.hbm_to_vmem [thread:$0]  (!%p3968_p11), %s4636_s8, 16, %s620_s4, [#allocation7]  }
  0x46   : > { %s4638_s29 = sld [smem:[#allocation44_spill]] }
  0x4c   : > { %s3351_s15 = scalar_lea.hbm %s4638_s29, 16 }
  0x4d   : > { %p3352_p12 = scmp.ne.s32.totalorder %s4638_s29, %s3351_s15  ;;  %p3358_p4 = scmp.lt.u32.totalorder %s3351_s15, %s4638_s29 }
  0x4f   : > { %p3354_p0 = pnand %p3352_p12, %p3984_p13 }
  0x51   : > { %p3355_p5 = pneg %p3354_p0 }
  0x53   : > { %p3360_p8 = pnand %p3358_p4, %p3355_p5 }
  0x55   : > { %3363 = shalt.err (!%p3360_p8)
}
  0x56   : > { %s3364_s4 = scalar_lea.vmem %s3972_s5, 16  ;;  %s3371_s10 = scalar_lea.vmem %s3972_s5, 32 }
  0x57   : > { %p3365_p9 = scmp.ne.s32.totalorder %s3972_s5, %s3364_s4  ;;  %p3372_p3 = scmp.lt.s32.totalorder %s3972_s5, %s3972_s5 }
  0x58   : > { %p3373_p6 = scmp.lt.s32.totalorder %s3371_s10, %s3364_s4 }
  0x59   : > { %p3367_p1 = pnand %p3365_p9, %p3984_p13 }
  0x5a   : > { %p3374_p7 = por %p3373_p6, %p3372_p3 }
  0x5b   : > { %p3368_p2 = pneg %p3367_p1 }
  0x5d   : > { %p3375_p10 = pnand %p3374_p7, %p3368_p2 }
  0x5f   : > { %3378 = shalt.err (!%p3375_p10)
}
  0x60   : > { %3201 = dma.hbm_to_vmem [thread:$0]  (!%p3968_p11), %s4638_s29, 16, %s3972_s5, [#allocation10]  }
  0x61   : > { %s4639_s9 = sld [smem:[#allocation47_spill]] }
  0x67   : > { %s3379_s21 = scalar_lea.hbm %s4639_s9, 16 }
  0x68   : > { %p3380_p12 = scmp.ne.s32.totalorder %s4639_s9, %s3379_s21  ;;  %p3386_p4 = scmp.lt.u32.totalorder %s3379_s21, %s4639_s9 }
  0x6a   : > { %p3382_p0 = pnand %p3380_p12, %p3984_p13 }
  0x6c   : > { %p3383_p5 = pneg %p3382_p0 }
  0x6e   : > { %p3388_p8 = pnand %p3386_p4, %p3383_p5 }
  0x70   : > { %3391 = shalt.err (!%p3388_p8)
}
  0x71   : > { %s3392_s5 = scalar_lea.vmem %s3974_s0, 16  ;;  %s3399_s10 = scalar_lea.vmem %s3974_s0, 32 }
  0x72   : > { %p3393_p9 = scmp.ne.s32.totalorder %s3974_s0, %s3392_s5  ;;  %p3400_p3 = scmp.lt.s32.totalorder %s3974_s0, %s3974_s0 }
  0x73   : > { %p3401_p6 = scmp.lt.s32.totalorder %s3399_s10, %s3392_s5 }
  0x74   : > { %p3395_p1 = pnand %p3393_p9, %p3984_p13 }
  0x75   : > { %p3402_p7 = por %p3401_p6, %p3400_p3 }
  0x76   : > { %p3396_p2 = pneg %p3395_p1 }
  0x78   : > { %p3403_p10 = pnand %p3402_p7, %p3396_p2 }
  0x7a   : > { %3406 = shalt.err (!%p3403_p10)
}
  0x7b   : > { %3207 = dma.hbm_to_vmem [thread:$0]  (!%p3968_p11), %s4639_s9, 16, %s3974_s0, [#allocation13]  }
  0x7c   : > { %s3774_s7 = smov [#allocation15]   ;;  %s4640_s13 = sld [smem:[#allocation50_spill]] }
  0x7d   : > { %s696_s3 = sshll.u32 %s3774_s7, 4  ;;  %s697_s3 = int_to_ptr.vmem [resolvable:$true] %s696_s3 }
  0x82   : > { %s3407_s2 = scalar_lea.hbm %s4640_s13, 512 }
  0x83   : > { %p3408_p12 = scmp.ne.s32.totalorder %s4640_s13, %s3407_s2  ;;  %p3414_p4 = scmp.lt.u32.totalorder %s3407_s2, %s4640_s13 }
  0x85   : > { %p3410_p0 = pnand %p3408_p12, %p3984_p13 }
  0x87   : > { %p3411_p5 = pneg %p3410_p0 }
  0x89   : > { %p3416_p8 = pnand %p3414_p4, %p3411_p5 }
  0x8b   : > { %3419 = shalt.err (!%p3416_p8)
}
  0x8c   : > { %s3420_s0 = scalar_lea.vmem %s697_s3, 512  ;;  %p3428_p3 = scmp.lt.s32.totalorder %s697_s3, %s697_s3 }
  0x8d   : > { %p3421_p9 = scmp.ne.s32.totalorder %s697_s3, %s3420_s0  ;;  %p3429_p6 = scmp.lt.s32.totalorder %s3420_s0, %s3420_s0 }
  0x8f   : > { %p3423_p1 = pnand %p3421_p9, %p3984_p13  ;;  %p3430_p7 = por %p3429_p6, %p3428_p3 }
  0x91   : > { %p3424_p2 = pneg %p3423_p1 }
  0x93   : > { %p3431_p10 = pnand %p3430_p7, %p3424_p2 }
  0x95   : > { %3434 = shalt.err (!%p3431_p10)
}
  0x96   : > { %s4609_s12 = smov 128   ;;  %s4610_s15 = smov 8  }
  0x97   : > { %3213 = dma.hbm_to_vmem [thread:$0]  (!%p3968_p11), %s4640_s13, 512, %s697_s3, [#allocation16], %s4609_s12, %s4609_s12, %s4610_s15  }
  0x98   : > { %s3777_s24 = smov [#allocation18]   ;;  %s3778_s23 = smov [#allocation21]  }
  0x99   : > { %s723_s2 = sshll.u32 %s3777_s24, 4  ;;  %s747_s4 = sshll.u32 %s3778_s23, 4  ;;  %s724_s2 = int_to_ptr.vmem [resolvable:$true] %s723_s2  ;;  %s4069_s4 = int_to_ptr.vmem [resolvable:$true] %s747_s4 }
  0x9a   : > { %s3435_s0 = scalar_lea.hbm %s4583_s16, 512 }
  0x9b   : > { %p3436_p12 = scmp.ne.s32.totalorder %s4583_s16, %s3435_s0  ;;  %p3442_p4 = scmp.lt.u32.totalorder %s3435_s0, %s4583_s16 }
  0x9d   : > { %p3438_p0 = pnand %p3436_p12, %p3984_p13 }
  0x9f   : > { %p3439_p5 = pneg %p3438_p0 }
  0xa1   : > { %p3444_p8 = pnand %p3442_p4, %p3439_p5 }
  0xa3   : > { %3447 = shalt.err (!%p3444_p8)
}
  0xa4   : > { %s3448_s21 = scalar_lea.vmem %s724_s2, 512  ;;  %p3456_p3 = scmp.lt.s32.totalorder %s724_s2, %s724_s2 }
  0xa5   : > { %p3449_p9 = scmp.ne.s32.totalorder %s724_s2, %s3448_s21  ;;  %p3457_p6 = scmp.lt.s32.totalorder %s3448_s21, %s3448_s21 }
  0xa7   : > { %p3451_p1 = pnand %p3449_p9, %p3984_p13  ;;  %p3458_p7 = por %p3457_p6, %p3456_p3 }
  0xa9   : > { %p3452_p2 = pneg %p3451_p1 }
  0xab   : > { %p3459_p10 = pnand %p3458_p7, %p3452_p2 }
  0xad   : > { %3462 = shalt.err (!%p3459_p10)
}
  0xae   : > { %3219 = dma.hbm_to_vmem [thread:$0]  (!%p3968_p11), %s4583_s16, 512, %s724_s2, [#allocation19], %s4609_s12, %s4609_s12, %s4610_s15  }
  0xaf   : > { %s3463_s5 = scalar_lea.hbm %s4585_s18, 512 }
  0xb0   : > { %p3464_p12 = scmp.ne.s32.totalorder %s4585_s18, %s3463_s5  ;;  %p3470_p4 = scmp.lt.u32.totalorder %s3463_s5, %s4585_s18 }
  0xb2   : > { %p3466_p0 = pnand %p3464_p12, %p3984_p13 }
  0xb4   : > { %p3467_p5 = pneg %p3466_p0 }
  0xb6   : > { %p3472_p8 = pnand %p3470_p4, %p3467_p5 }
  0xb8   : > { %3475 = shalt.err (!%p3472_p8)
}
  0xb9   : > { %s3476_s2 = scalar_lea.vmem %s4069_s4, 512  ;;  %p3484_p3 = scmp.lt.s32.totalorder %s4069_s4, %s4069_s4 }
  0xba   : > { %p3477_p9 = scmp.ne.s32.totalorder %s4069_s4, %s3476_s2  ;;  %p3485_p6 = scmp.lt.s32.totalorder %s3476_s2, %s3476_s2 }
  0xbc   : > { %p3479_p1 = pnand %p3477_p9, %p3984_p13  ;;  %p3486_p7 = por %p3485_p6, %p3484_p3 }
  0xbe   : > { %p3480_p2 = pneg %p3479_p1 }
  0xc0   : > { %p3487_p10 = pnand %p3486_p7, %p3480_p2 }
  0xc2   : > { %3490 = shalt.err (!%p3487_p10)
}
  0xc3   : > { %3225 = dma.hbm_to_vmem [thread:$0]  (!%p3968_p11), %s4585_s18, 512, %s4069_s4, [#allocation22], %s4609_s12, %s4609_s12, %s4610_s15  }
  0xc4   : > { %s3779_s8 = smov [#allocation4]   ;;  %s3780_s23 = smov [#allocation8]  }
  0xc5   : > { %s608_s24 = sshll.u32 %s3779_s8, 4  ;;  %s633_s5 = sshll.u32 %s3780_s23, 4  ;;  %s609_s24 = int_to_ptr.vmem [resolvable:$true] %s608_s24  ;;  %s4118_s5 = int_to_ptr.vmem [resolvable:$true] %s633_s5 }
  0xc6   : > { %s4641_s7 = sld [smem:[#allocation40_spill]] }
  0xcc   : > { %s3491_s3 = scalar_lea.hbm %s4641_s7, 128 }
  0xcd   : > { %p3492_p12 = scmp.ne.s32.totalorder %s4641_s7, %s3491_s3  ;;  %p3498_p4 = scmp.lt.u32.totalorder %s3491_s3, %s4641_s7 }
  0xcf   : > { %p3494_p0 = pnand %p3492_p12, %p3984_p13 }
  0xd1   : > { %p3495_p5 = pneg %p3494_p0 }
  0xd3   : > { %p3500_p8 = pnand %p3498_p4, %p3495_p5 }
  0xd5   : > { %3503 = shalt.err (!%p3500_p8)
}
  0xd6   : > { %s3504_s9 = scalar_lea.vmem %s609_s24, 128  ;;  %p3512_p3 = scmp.lt.s32.totalorder %s609_s24, %s609_s24 }
  0xd7   : > { %p3505_p9 = scmp.ne.s32.totalorder %s609_s24, %s3504_s9  ;;  %p3513_p6 = scmp.lt.s32.totalorder %s3504_s9, %s3504_s9 }
  0xd9   : > { %p3507_p1 = pnand %p3505_p9, %p3984_p13  ;;  %p3514_p7 = por %p3513_p6, %p3512_p3 }
  0xdb   : > { %p3508_p2 = pneg %p3507_p1 }
  0xdd   : > { %p3515_p10 = pnand %p3514_p7, %p3508_p2 }
  0xdf   : > { %3518 = shalt.err (!%p3515_p10)
}
  0xe0   : > { %3192 = dma.hbm_to_vmem [thread:$0]  (!%p3968_p11), %s4641_s7, 128, %s609_s24, [#allocation5]  }
  0xe1   : > { %s4642_s0 = sld [smem:[#allocation43_spill]] }
  0xe7   : > { %s3519_s3 = scalar_lea.hbm %s4642_s0, 16 }
  0xe8   : > { %p3520_p12 = scmp.ne.s32.totalorder %s4642_s0, %s3519_s3  ;;  %p3526_p4 = scmp.lt.u32.totalorder %s3519_s3, %s4642_s0 }
  0xea   : > { %p3522_p0 = pnand %p3520_p12, %p3984_p13 }
  0xec   : > { %p3523_p5 = pneg %p3522_p0 }
  0xee   : > { %p3528_p8 = pnand %p3526_p4, %p3523_p5 }
  0xf0   : > { %3531 = shalt.err (!%p3528_p8)
}
  0xf1   : > { %s3532_s24 = scalar_lea.vmem %s4118_s5, 16  ;;  %s3539_s13 = scalar_lea.vmem %s4118_s5, 32 }
  0xf2   : > { %p3533_p9 = scmp.ne.s32.totalorder %s4118_s5, %s3532_s24  ;;  %p3540_p3 = scmp.lt.s32.totalorder %s4118_s5, %s4118_s5 }
  0xf3   : > { %p3541_p6 = scmp.lt.s32.totalorder %s3539_s13, %s3532_s24 }
  0xf4   : > { %p3535_p1 = pnand %p3533_p9, %p3984_p13 }
  0xf5   : > { %p3542_p7 = por %p3541_p6, %p3540_p3 }
  0xf6   : > { %p3536_p2 = pneg %p3535_p1 }
  0xf8   : > { %p3543_p10 = pnand %p3542_p7, %p3536_p2 }
  0xfa   : > { %3546 = shalt.err (!%p3543_p10)
}
  0xfb   : > { %3198 = dma.hbm_to_vmem [thread:$0]  (!%p3968_p11), %s4642_s0, 16, %s4118_s5, [#allocation7]  }
  0xfc   : > { %s3781_s10 = smov [#allocation11]   ;;  %s3782_s2 = smov [#allocation14]  }
  0xfd   : > { %s658_s3 = sshll.u32 %s3781_s10, 4  ;;  %s683_s21 = sshll.u32 %s3782_s2, 4  ;;  %s659_s3 = int_to_ptr.vmem [resolvable:$true] %s658_s3  ;;  %s4162_s21 = int_to_ptr.vmem [resolvable:$true] %s683_s21 }
  0xfe   : > { %s4643_s24 = sld [smem:[#allocation46_spill]] }
 0x104   : > { %s3547_s13 = scalar_lea.hbm %s4643_s24, 16 }
 0x105   : > { %p3548_p12 = scmp.ne.s32.totalorder %s4643_s24, %s3547_s13  ;;  %p3554_p4 = scmp.lt.u32.totalorder %s3547_s13, %s4643_s24 }
 0x107   : > { %p3550_p0 = pnand %p3548_p12, %p3984_p13 }
 0x109   : > { %p3551_p5 = pneg %p3550_p0 }
 0x10b   : > { %p3556_p8 = pnand %p3554_p4, %p3551_p5 }
 0x10d   : > { %3559 = shalt.err (!%p3556_p8)
}
 0x10e   : > { %s3560_s23 = scalar_lea.vmem %s659_s3, 16  ;;  %s3567_s10 = scalar_lea.vmem %s659_s3, 32 }
 0x10f   : > { %p3561_p9 = scmp.ne.s32.totalorder %s659_s3, %s3560_s23  ;;  %p3568_p3 = scmp.lt.s32.totalorder %s659_s3, %s659_s3 }
 0x110   : > { %p3569_p6 = scmp.lt.s32.totalorder %s3567_s10, %s3560_s23 }
 0x111   : > { %p3563_p1 = pnand %p3561_p9, %p3984_p13 }
 0x112   : > { %p3570_p7 = por %p3569_p6, %p3568_p3 }
 0x113   : > { %p3564_p2 = pneg %p3563_p1 }
 0x115   : > { %p3571_p10 = pnand %p3570_p7, %p3564_p2 }
 0x117   : > { %3574 = shalt.err (!%p3571_p10)
}
 0x118   : > { %3204 = dma.hbm_to_vmem [thread:$0]  (!%p3968_p11), %s4643_s24, 16, %s659_s3, [#allocation10]  }
 0x119   : > { %s3575_s9 = scalar_lea.hbm %s4578_s11, 16 }
 0x11a   : > { %p3576_p12 = scmp.ne.s32.totalorder %s4578_s11, %s3575_s9  ;;  %p3582_p4 = scmp.lt.u32.totalorder %s3575_s9, %s4578_s11 }
 0x11c   : > { %p3578_p0 = pnand %p3576_p12, %p3984_p13 }
 0x11e   : > { %p3579_p5 = pneg %p3578_p0 }
 0x120   : > { %p3584_p8 = pnand %p3582_p4, %p3579_p5 }
 0x122   : > { %3587 = shalt.err (!%p3584_p8)
}
 0x123   : > { %s3588_s3 = scalar_lea.vmem %s4162_s21, 16  ;;  %s3595_s10 = scalar_lea.vmem %s4162_s21, 32 }
 0x124   : > { %p3589_p9 = scmp.ne.s32.totalorder %s4162_s21, %s3588_s3  ;;  %p3596_p3 = scmp.lt.s32.totalorder %s4162_s21, %s4162_s21 }
 0x125   : > { %p3597_p6 = scmp.lt.s32.totalorder %s3595_s10, %s3588_s3 }
 0x126   : > { %p3591_p1 = pnand %p3589_p9, %p3984_p13 }
 0x127   : > { %p3598_p7 = por %p3597_p6, %p3596_p3 }
 0x128   : > { %p3592_p2 = pneg %p3591_p1 }
 0x12a   : > { %p3599_p10 = pnand %p3598_p7, %p3592_p2 }
 0x12c   : > { %3602 = shalt.err (!%p3599_p10)
}
 0x12d   : > { %3210 = dma.hbm_to_vmem [thread:$0]  (!%p3968_p11), %s4578_s11, 16, %s4162_s21, [#allocation13]  }
 0x12e   : > { %s3783_s2 = smov [#allocation17]   ;;  %s3784_s9 = smov [#allocation20]  }
 0x12f   : > { %s710_s4 = sshll.u32 %s3783_s2, 4  ;;  %s737_s13 = sshll.u32 %s3784_s9, 4  ;;  %s711_s4 = int_to_ptr.vmem [resolvable:$true] %s710_s4  ;;  %s4206_s13 = int_to_ptr.vmem [resolvable:$true] %s737_s13 }
 0x130   : > { %s3603_s23 = scalar_lea.hbm %s4581_s14, 16 }
 0x131   : > { %p3604_p12 = scmp.ne.s32.totalorder %s4581_s14, %s3603_s23  ;;  %p3610_p4 = scmp.lt.u32.totalorder %s3603_s23, %s4581_s14 }
 0x133   : > { %p3606_p0 = pnand %p3604_p12, %p3984_p13 }
 0x135   : > { %p3607_p5 = pneg %p3606_p0 }
 0x137   : > { %p3612_p8 = pnand %p3610_p4, %p3607_p5 }
 0x139   : > { %3615 = shalt.err (!%p3612_p8)
}
 0x13a   : > { %s3616_s15 = scalar_lea.vmem %s711_s4, 16  ;;  %s3623_s2 = scalar_lea.vmem %s711_s4, 32 }
 0x13b   : > { %p3617_p9 = scmp.ne.s32.totalorder %s711_s4, %s3616_s15  ;;  %p3624_p3 = scmp.lt.s32.totalorder %s711_s4, %s711_s4 }
 0x13c   : > { %p3625_p6 = scmp.lt.s32.totalorder %s3623_s2, %s3616_s15 }
 0x13d   : > { %p3619_p1 = pnand %p3617_p9, %p3984_p13 }
 0x13e   : > { %p3626_p7 = por %p3625_p6, %p3624_p3 }
 0x13f   : > { %p3620_p2 = pneg %p3619_p1 }
 0x141   : > { %p3627_p10 = pnand %p3626_p7, %p3620_p2 }
 0x143   : > { %3630 = shalt.err (!%p3627_p10)
}
 0x144   : > { %3216 = dma.hbm_to_vmem [thread:$0]  (!%p3968_p11), %s4581_s14, 16, %s711_s4, [#allocation16]  }
 0x145   : > { %s3631_s3 = scalar_lea.hbm %s4584_s17, 16 }
 0x146   : > { %p3632_p12 = scmp.ne.s32.totalorder %s4584_s17, %s3631_s3  ;;  %p3638_p4 = scmp.lt.u32.totalorder %s3631_s3, %s4584_s17 }
 0x148   : > { %p3634_p0 = pnand %p3632_p12, %p3984_p13 }
 0x14a   : > { %p3635_p5 = pneg %p3634_p0 }
 0x14c   : > { %p3640_p8 = pnand %p3638_p4, %p3635_p5 }
 0x14e   : > { %3643 = shalt.err (!%p3640_p8)
}
 0x14f   : > { %s3644_s4 = scalar_lea.vmem %s4206_s13, 16  ;;  %s3651_s2 = scalar_lea.vmem %s4206_s13, 32 }
 0x150   : > { %p3645_p9 = scmp.ne.s32.totalorder %s4206_s13, %s3644_s4  ;;  %p3652_p3 = scmp.lt.s32.totalorder %s4206_s13, %s4206_s13 }
 0x151   : > { %p3653_p6 = scmp.lt.s32.totalorder %s3651_s2, %s3644_s4 }
 0x152   : > { %p3647_p1 = pnand %p3645_p9, %p3984_p13 }
 0x153   : > { %p3654_p7 = por %p3653_p6, %p3652_p3 }
 0x154   : > { %p3648_p2 = pneg %p3647_p1 }
 0x156   : > { %p3655_p10 = pnand %p3654_p7, %p3648_p2 }
 0x158   : > { %3658 = shalt.err (!%p3655_p10)
}
 0x159   : > { %3222 = dma.hbm_to_vmem [thread:$0]  (!%p3968_p11), %s4584_s17, 16, %s4206_s13, [#allocation19]  }
 0x15a   : > { %s3785_s5 = smov [#allocation23]   ;;  %s3786_s3 = smov [#allocation24]  }
 0x15b   : > { %s760_s23 = sshll.u32 %s3785_s5, 4  ;;  %s774_s10 = sshll.u32 %s3786_s3, 4  ;;  %s761_s23 = int_to_ptr.vmem [resolvable:$true] %s760_s23  ;;  %s4250_s10 = int_to_ptr.vmem [resolvable:$true] %s774_s10 }
 0x15c   : > { %s3659_s15 = scalar_lea.hbm %s4586_s19, 512 }
 0x15d   : > { %p3660_p12 = scmp.ne.s32.totalorder %s4586_s19, %s3659_s15  ;;  %p3666_p4 = scmp.lt.u32.totalorder %s3659_s15, %s4586_s19 }
 0x15f   : > { %p3662_p0 = pnand %p3660_p12, %p3984_p13 }
 0x161   : > { %p3663_p5 = pneg %p3662_p0 }
 0x163   : > { %p3668_p8 = pnand %p3666_p4, %p3663_p5 }
 0x165   : > { %3671 = shalt.err (!%p3668_p8)
}
 0x166   : > { %s3672_s8 = scalar_lea.vmem %s761_s23, 512  ;;  %p3680_p3 = scmp.lt.s32.totalorder %s761_s23, %s761_s23 }
 0x167   : > { %p3673_p9 = scmp.ne.s32.totalorder %s761_s23, %s3672_s8  ;;  %p3681_p6 = scmp.lt.s32.totalorder %s3672_s8, %s3672_s8 }
 0x169   : > { %p3675_p1 = pnand %p3673_p9, %p3984_p13  ;;  %p3682_p7 = por %p3681_p6, %p3680_p3 }
 0x16b   : > { %p3676_p2 = pneg %p3675_p1 }
 0x16d   : > { %p3683_p10 = pnand %p3682_p7, %p3676_p2 }
 0x16f   : > { %3686 = shalt.err (!%p3683_p10)
}
 0x170   : > { %s4644_s5 = smov 8   ;;  %s4645_s3 = smov 128  }
 0x171   : > { %3228 = dma.hbm_to_vmem [thread:$0]  (!%p3968_p11), %s4586_s19, 512, %s761_s23, [#allocation22], %s4645_s3, %s4645_s3, %s4644_s5  }
 0x172   : > { %s3687_s2 = scalar_lea.hbm %s4587_s20, 16 }
 0x173   : > { %p3688_p12 = scmp.ne.s32.totalorder %s4587_s20, %s3687_s2  ;;  %p3694_p4 = scmp.lt.u32.totalorder %s3687_s2, %s4587_s20 }
 0x175   : > { %p3690_p0 = pnand %p3688_p12, %p3984_p13 }
 0x177   : > { %p3691_p5 = pneg %p3690_p0 }
 0x179   : > { %p3696_p8 = pnand %p3694_p4, %p3691_p5 }
 0x17b   : > { %3699 = shalt.err (!%p3696_p8)
}
 0x17c   : > { %s3700_s23 = scalar_lea.vmem %s4250_s10, 16  ;;  %s3707_s5 = scalar_lea.vmem %s4250_s10, 32 }
 0x17d   : > { %p3701_p9 = scmp.ne.s32.totalorder %s4250_s10, %s3700_s23  ;;  %p3708_p3 = scmp.lt.s32.totalorder %s4250_s10, %s4250_s10 }
 0x17e   : > { %p3709_p6 = scmp.lt.s32.totalorder %s3707_s5, %s3700_s23 }
 0x17f   : > { %p3703_p1 = pnand %p3701_p9, %p3984_p13 }
 0x180   : > { %p3710_p7 = por %p3709_p6, %p3708_p3 }
 0x181   : > { %p3704_p2 = pneg %p3703_p1 }
 0x183   : > { %p3711_p10 = pnand %p3710_p7, %p3704_p2 }
 0x185   : > { %3714 = shalt.err (!%p3711_p10)
}
 0x186   : > { %3231 = dma.hbm_to_vmem [thread:$0]  (!%p3968_p11), %s4587_s20, 16, %s4250_s10, [#allocation25]  }
 0x187   : > { %p2789_p12 = scmp.ge.s32.totalorder %s3769_s6, 2 }
 0x188   : > { %p4646_p13 = scmp.ne.s32.totalorder (!%p2789_p12), %s4631_s30, 0 }
 0x189   : > { %787 = sbr.rel (%p2789_p12) target bundleno = 411 (0x19b), region = 100 }
 0x190   : > { %797 = sbr.rel (!%p4646_p13) target bundleno = 411 (0x19b), region = 108  ;;  %s799_s1 = sand.u32 (%p4646_p13), 1, %s3765_s28  }
 0x191   : > { %s2791_s12 = sshll.u32 (%p4646_p13), %s3769_s6, 3  ;;  %s2790_s21 = sshll.u32 (%p4646_p13), %s799_s1, 4 }
 0x192   : > { %s4647_s2 = sld [smem:[#allocation39_spill]] (%p4646_p13)  ;;  %s801_s9 = scalar_lea.vmem (%p4646_p13), [#allocation3], %s2790_s21 }
 0x198   : > { %s803_s26 = scalar_lea.vmem %s4647_s2, %s2791_s12 }
 0x199   : > { %v833_v1 = vld [vmem:[%s803_s26] sm:$0xff]  ;;  %v835_v2 = vld [vmem:[%s803_s26 + $0x10] sm:$0xff] }
 0x19a   : > { %834 = vst [vmem:[%s801_s9] sm:$0xff] %v833_v1  ;;  %836 = vst [vmem:[%s801_s9 + $0x8] sm:$0xff] %v835_v2 }
 0x19b PF: > { %p4648_p11 = scmp.ne.s32.totalorder %s4634_s25, 0 }
 0x19c   : > { %s848_s30 = sand.u32 (!%p4648_p11), 1, %s3761_s27   ;;  %p4649_p0 = scmp.eq.s32.totalorder (!%p4648_p11), %s3934_s22, 0 }
 0x19d   : > { %845 = sbr.rel (%p4648_p11) target bundleno = 2471 (0x9a7), region = 146  ;;  %s4308_s10 = sshll.u32 (!%p4648_p11), %s848_s30, 4 }
 0x19e   : > { %s850_s6 = scalar_lea.vmem (!%p4648_p11), [#allocation3], %s4308_s10 }
 0x1a4   : > { %3728 = dma.done.wait (%p4649_p0), [#allocation5], 128   ;;  %p4650_p5 = pmov %p4649_p0 }
 0x1a5   : > { %p4651_p4 = pmov %p4649_p0 }
 0x1a6   : > { %3730 = vsyncadd (%p4650_p5), [#allocation5], 4294967168 }
 0x1a7   : > { %3732 = dma.done.wait (%p4651_p4), [#allocation7], 32   ;;  %p4652_p8 = pmov %p4649_p0 }
 0x1a8   : > { %p4653_p9 = pmov %p4649_p0 }
 0x1a9   : > { %3734 = vsyncadd (%p4652_p8), [#allocation7], 4294967264 }
 0x1aa   : > { %3736 = dma.done.wait (%p4653_p9), [#allocation10], 32   ;;  %p4654_p1 = pmov %p4649_p0 }
 0x1ab   : > { %p4655_p2 = pmov %p4649_p0 }
 0x1ac   : > { %3738 = vsyncadd (%p4654_p1), [#allocation10], 4294967264 }
 0x1ad   : > { %3740 = dma.done.wait (%p4655_p2), [#allocation13], 32   ;;  %p4656_p3 = pmov %p4649_p0 }
 0x1ae   : > { %p4657_p6 = pmov %p4649_p0 }
 0x1af   : > { %3742 = vsyncadd (%p4656_p3), [#allocation13], 4294967264 }
 0x1b0   : > { %3744 = dma.done.wait (%p4657_p6), [#allocation16], 528   ;;  %p4658_p7 = pmov %p4649_p0 }
 0x1b1   : > { %p4659_p10 = pmov %p4649_p0 }
 0x1b2   : > { %3746 = vsyncadd (%p4658_p7), [#allocation16], 4294966768 }
 0x1b3   : > { %3748 = dma.done.wait (%p4659_p10), [#allocation19], 528   ;;  %p4660_p12 = pmov %p4649_p0 }
 0x1b4   : > { %p4661_p13 = pmov %p4649_p0 }
 0x1b5   : > { %3750 = vsyncadd (%p4660_p12), [#allocation19], 4294966768 }
 0x1b6   : > { %3752 = dma.done.wait (%p4661_p13), [#allocation22], 1024   ;;  %p4662_p11 = pmov %p4649_p0 }
 0x1b8   : > { %3754 = vsyncadd (%p4662_p11), [#allocation22], 4294966272 }
 0x1b9   : > { %3756 = dma.done.wait (%p4649_p0), [#allocation25], 16   ;;  %p4663_p5 = pmov %p4649_p0 }
 0x1ba   : > { %p976_p4 = scmp.lt.s32.totalorder %s3934_s22, 1  ;;  %v3787_v3 = vmov 0.0   ;;  %vm3788_vm0 = vmmov 0   ;;  %s4664_s23 = sld [smem:[#allocation38_spill]]  ;;  %vm1005_vm1 = vcmask 64512   ;;  %v4361_v5 = vld [vmem:[%s850_s6] sm:$0xff] }
 0x1bb   : > { %3758 = vsyncadd (%p4663_p5), [#allocation25], 4294967280  ;;  %2918 = vmatprep.subr.mxu0 %v3787_v3  ;;  %2923 = vmatprep.subr.mxu1 %v3787_v3  ;;  %v4363_v6 = vld [vmem:[#allocation4] sm:$0xff]  ;;  %s4665_s1 = sld [smem:[#allocation42_spill]]  ;;  %vm1227_vm2 = vcmask 1040384   ;;  %v3789_v13 = vmov 0.0|0.0  }
 0x1bc   : > { %s4347_s27 = scalar_select %p976_p4, %s3934_s22, 1  ;;  %2920 = vmatprep.mubr.msk.f32.mxu0 %vm3788_vm0, %v3787_v3  ;;  %2925 = vmatprep.mubr.msk.f32.mxu1 %vm3788_vm0, %v3787_v3  ;;  %v986_v12 = vld [vmem:[#allocation6] sm:$0x1]  ;;  %vm1149_vm3 = vcmask 261120   ;;  %vm1223_vm4 = vcmask 7168  }
 0x1bd   : > { %2924 = vmatpush3.msra.mxu1 %v4361_v5  ;;  %s4666_s13 = sld [smem:[#allocation45_spill]]  ;;  %v992_v18 = vld [vmem:[#allocation9] sm:$0x1]  ;;  %s4667_s4 = sld [smem:[#allocation48_spill]]  ;;  %v2816_v33 = vld [vmem:[#allocation8] ss:$0 sm:$0xff] }
 0x1be   : > { %s2809_s25 = sshll.u32 %s4347_s27, 3  ;;  %2926 = vmatmul.mubr.msk.f32.vlgmr.msra.gmra.mrb[0].mxu1 %vm1005_vm1, %v4363_v6  ;;  %2939 = vmatprep.subr.mxu1 %v3787_v3  ;;  %v998_v49 = vld [vmem:[#allocation12] sm:$0x1]  ;;  %v4450_v54 = vld [vmem:[%s850_s6 + $0x8] sm:$0xff]  ;;  %s4668_s3 = sld [smem:[#allocation49_spill]] }
 0x1bf   : > { %2940 = vmatpush3.msk.msra.mxu1 %vm1227_vm2, %v986_v12  ;;  %2941 = vmatprep.mubr.msk.f32.mxu1 %vm3788_vm0, %v3787_v3  ;;  %v2821_v61 = vld [vmem:[#allocation11] ss:$0 sm:$0xff]  ;;  %v2827_v1 = vld [vmem:[#allocation14] ss:$0 sm:$0xff]  ;;  %s4474_s9 = scalar_lea.vmem [#allocation26], %s4308_s10  ;;  %s4669_s8 = sld [smem:[#allocation51_spill]] }
 0x1c0   : > { %s979_s5 = scalar_lea.vmem %s4664_s23, %s2809_s25  ;;  %3079 = vmatprep.subr.bf16.mxu1 %v3789_v13  ;;  %s4670_s26 = sld [smem:[#allocation52_spill]] }
 0x1c1   : > { %v985_v4 = vld [vmem:[%s979_s5] sm:$0xff]  ;;  %v988_v8 = vld [vmem:[%s4665_s1 + $0x8] sm:$0xff]  ;;  %v989_v9 = vld [vmem:[%s4665_s1 + $0x10] sm:$0xff]  ;;  %s4671_s15 = sld [smem:[#allocation53_spill]]  ;;  %s4672_s10 = sld [smem:[#allocation37_spill]] }
 0x1c2   : > { %2919 = vmatpush3.msra.mxu0 %v985_v4  ;;  %v987_v7 = vld [vmem:[%s4665_s1] sm:$0xff]  ;;  %v990_v11 = vld [vmem:[%s4665_s1 + $0x18] sm:$0xff] }
 0x1c3   : > { %2921 = vmatmul.mubr.msk.f32.vlgmr.msra.gmra.mrb[0].mxu0 %vm1005_vm1, %v4363_v6  ;;  %v3074_v10 = vpack.c.bf16 %v988_v8, %v987_v7  ;;  %3073 = vmatprep.subr.bf16.mxu0 %v3789_v13  ;;  %v3077_v14 = vpack.c.bf16 %v990_v11, %v989_v9  ;;  %v993_v15 = vld [vmem:[%s4666_s13] sm:$0xff]  ;;  %v994_v16 = vld [vmem:[%s4666_s13 + $0x8] sm:$0xff]  ;;  %v995_v19 = vld [vmem:[%s4666_s13 + $0x10] sm:$0xff] }
 0x1c4   : > { %2936 = vmatprep.mubr.msk.f32.mxu0 %vm3788_vm0, %v3787_v3  ;;  %v3080_v17 = vpack.c.bf16 %v994_v16, %v993_v15  ;;  %v996_v20 = vld [vmem:[%s4666_s13 + $0x18] sm:$0xff]  ;;  %v999_v26 = vld [vmem:[%s4667_s4] sm:$0xff]  ;;  %v1000_v27 = vld [vmem:[%s4667_s4 + $0x8] sm:$0xff] }
 0x1c5   : > { %3075 = vmatpush3.bf16.msra.mxu0 %v3074_v10  ;;  %v3083_v25 = vpack.c.bf16 %v996_v20, %v995_v19  ;;  %v1001_v28 = vld [vmem:[%s4667_s4 + $0x10] sm:$0xff]  ;;  %v3086_v29 = vpack.c.bf16 %v1000_v27, %v999_v26  ;;  %v1002_v30 = vld [vmem:[%s4667_s4 + $0x18] sm:$0xff]  ;;  %v1699_v55 = vld [vmem:[%s4668_s3] sm:$0xff] }
 0x1c6   : > { %3076 = vmatprep.subr.bf16.mxu0 %v3789_v13  ;;  %v3089_v31 = vpack.c.bf16 %v1002_v30, %v1001_v28  ;;  %v1700_v56 = vld [vmem:[%s4668_s3 + $0x8] sm:$0xff]  ;;  %v1701_v58 = vld [vmem:[%s4668_s3 + $0x10] sm:$0xff]  ;;  %v1702_v59 = vld [vmem:[%s4668_s3 + $0x18] sm:$0xff] }
 0x1c7   : > { %v3098_v57 = vpack.c.bf16 %v1700_v56, %v1699_v55  ;;  %v3101_v60 = vpack.c.bf16 %v1702_v59, %v1701_v58  ;;  %v1704_v15 = vld [vmem:[#allocation15 + $0x8] sm:$0xff]  ;;  %v1705_v19 = vld [vmem:[#allocation15 + $0x10] sm:$0xff]  ;;  %v1706_v20 = vld [vmem:[#allocation15 + $0x18] sm:$0xff]  ;;  %s983_s2 = scalar_lea.vmem %s4671_s15, %s2809_s25  ;;  %p4673_p8 = scmp.ne.s32.totalorder %s4672_s10, 0 }
 0x1c8   : > { %v1709_v30 = vld [vmem:[%s4669_s8 + $0x8] sm:$0xff]  ;;  %v1717_v59 = vld [vmem:[#allocation21] sm:$0xff]  ;;  %s2847_s30 = sshll.u32 (%p4673_p8), %s3934_s22, 3  ;;  %s4674_s5 = sld [smem:[#allocation54_spill]] (%p4673_p8) }
 0x1c9   : > { %3078 = vmatpush3.bf16.msra.mxu0 %v3077_v14  ;;  %v1703_v14 = vld [vmem:[#allocation15] sm:$0xff] }
 0x1ca   : > { %2955 = vmatprep.subr.mxu0 %v3787_v3 }
 0x1ce   : > { %s2507_s0 = scalar_lea.vmem (%p4673_p8), %s4674_s5, %s2847_s30 }
 0x291   : > { %v1145_v22 = vpop.f32.mrb[0].mxu1 }
 0x292   : > { %v2927_v24 = vpop.f32.mrb[1].mxu1  ;;  %2937 = vmatmul.mubr.msk.f32.vlgmr.msra.gmra.mrb[2].mxu0 %vm1149_vm3, %v1145_v22 }
 0x293   : > { %2956 = vmatpush3.msk.msra.mxu0 %vm1227_vm2, %v992_v18  ;;  %2957 = vmatprep.mubr.msk.f32.mxu0 %vm3788_vm0, %v3787_v3  ;;  %v3092_v18 = vpack.c.bf16 %v1704_v15, %v1703_v14  ;;  %v1714_v24 = vld [vmem:[#allocation18 + $0x10] sm:$0xff]  ;;  %v2837_v15 = vld [vmem:[#allocation20] ss:$0 sm:$0xff] }
 0x294   : > { %2960 = vmatprep.subr.mxu0 %v3787_v3 }
 0x296   : > { %v1075_v21 = vpop.f32.mrb[0].mxu0 }
 0x297   : > { %v2922_v23 = vpop.f32.mrb[1].mxu0  ;;  %2942 = vmatmul.mubr.msk.f32.vlgmr.msra.gmra.mrb[2].mxu1 %vm1223_vm4, %v1075_v21  ;;  %2958 = vmatmul.mubr.msk.f32.vlgmr.msra.gmra.mrb[4].mxu0 %vm1223_vm4, %v1075_v21 }
 0x298   : > { %3081 = vmatpush3.bf16.msra.mxu1 %v3080_v17  ;;  %2952 = vmatprep.mubr.msk.f32.mxu1 %vm3788_vm0, %v3787_v3 }
 0x299   : > { %3082 = vmatprep.subr.bf16.mxu1 %v3789_v13  ;;  %2962 = vmatprep.mubr.msk.f32.mxu0 %vm3788_vm0, %v3787_v3 }
 0x29c   : > { %3084 = vmatpush3.bf16.msra.mxu1 %v3083_v25  ;;  %v1715_v25 = vld [vmem:[#allocation18 + $0x18] sm:$0xff] }
 0x29d   : > { %3085 = vmatprep.subr.bf16.mxu1 %v3789_v13  ;;  %v3107_v28 = vpack.c.bf16 %v1715_v25, %v1714_v24 }
 0x29f   : > { %2953 = vmatmul.mubr.msk.f32.vlgmr.msra.gmra.mrb[4].mxu1 %vm1149_vm3, %v1145_v22  ;;  %v1713_v22 = vld [vmem:[#allocation18 + $0x8] sm:$0xff] }
 0x2a0   : > { %2973 = vmatprep.mubr.msk.f32.mxu1 %vm3788_vm0, %v3787_v3  ;;  %3087 = vmatpush3.bf16.msra.mxu1 %v3086_v29  ;;  %v1708_v29 = vld [vmem:[%s4669_s8] sm:$0xff] }
 0x2a1   : > { %3088 = vmatprep.subr.bf16.mxu1 %v3789_v13 }
 0x2a4   : > { %3090 = vmatpush3.bf16.msra.mxu1 %v3089_v31  ;;  %v3110_v31 = vpack.c.bf16 %v1709_v30, %v1708_v29 }
 0x2a5   : > { %2986 = vmatprep.subr.mxu1 %v3787_v3 }
 0x365   : > { %v1219_v32 = vpop.f32.mrb[2].mxu0 }
 0x366   : > { %v2938_v36 = vpop.f32.mrb[3].mxu0 }
 0x36a   : > { %v1297_v34 = vpop.f32.mrb[2].mxu1  ;;  %v1453_v39 = vpop.f32.mrb[4].mxu0 }
 0x36b   : > { %v1298_v35 = vadd.f32 %v1297_v34, %v1219_v32  ;;  %v2943_v37 = vpop.f32.mrb[3].mxu1  ;;  %v2959_v41 = vpop.f32.mrb[5].mxu0  ;;  %v1710_v32 = vld [vmem:[%s4669_s8 + $0x10] sm:$0xff] }
 0x36c   : > { %v1721_v41 = vld [vmem:[#allocation23] sm:$0xff] }
 0x36d   : > { %v1307_v38 = vadd.f32 %v2816_v33, %v1298_v35  ;;  %v1711_v33 = vld [vmem:[%s4669_s8 + $0x18] sm:$0xff] }
 0x36e   : > { %v3113_v36 = vpack.c.bf16 %v1711_v33, %v1710_v32 }
 0x36f   : > { %v2817_v40 = vmul.f32 -1.442695, %v1307_v38 }
 0x371   : > { %3303 = vpow2.f32 %v2817_v40 }
 0x372   : > { %v1380_v42 = vpop.f32.mrb[4].mxu1 }
 0x373   : > { %v1454_v43 = vadd.f32 %v1453_v39, %v1380_v42  ;;  %v2954_v44 = vpop.f32.mrb[5].mxu1  ;;  %v1722_v42 = vld [vmem:[#allocation23 + $0x8] sm:$0xff] }
 0x374   : > { %v3116_v44 = vpack.c.bf16 %v1722_v42, %v1721_v41 }
 0x375   : > { %v1463_v62 = vadd.f32 %v2821_v61, %v1454_v43  ;;  %v1723_v43 = vld [vmem:[#allocation23 + $0x10] sm:$0xff] }
 0x377   : > { %v2822_v63 = vmul.f32 -1.442695, %v1463_v62 }
 0x37b   : > { %v3304_v45 = vpop.eup %3303 }
 0x37c   : > { %v1311_v46 = vadd.f32 1.0, %v3304_v45  ;;  %v1724_v45 = vld [vmem:[#allocation23 + $0x18] sm:$0xff] }
 0x37e   : > { %3305 = vrcp.f32 %v1311_v46  ;;  %v3119_v46 = vpack.c.bf16 %v1724_v45, %v1723_v43 }
 0x37f   : > { %3307 = vpow2.f32 %v2822_v63 }
 0x388   : > { %v3306_v47 = vpop.eup %3305 }
 0x389   : > { %v1470_v48 = vmul.f32 %v3306_v47, %v4361_v5  ;;  %v3308_v0 = vpop.eup %3307  ;;  %v2833_v47 = vld [vmem:[#allocation17] ss:$0 sm:$0xff] }
 0x38a   : > { %v1467_v8 = vadd.f32 1.0, %v3308_v0  ;;  %v1719_v0 = vld [vmem:[#allocation21 + $0x10] sm:$0xff] }
 0x38b   : > { %2961 = vmatpush3.msra.mxu0 %v1470_v48 }
 0x38c   : > { %2963 = vmatmul.mubr.msk.f32.vlgmr.msra.gmra.mrb[6].mxu0 %vm1005_vm1, %v4363_v6  ;;  %2976 = vmatprep.subr.mxu0 %v3787_v3 }
 0x38d   : > { %2977 = vmatpush3.msk.msra.mxu0 %vm1227_vm2, %v998_v49  ;;  %2978 = vmatprep.mubr.msk.f32.mxu0 %vm3788_vm0, %v3787_v3 }
 0x38e   : > { %2981 = vmatprep.subr.mxu0 %v3787_v3 }
 0x390   : > { %2979 = vmatmul.mubr.msk.f32.vlgmr.msra.gmra.mrb[8].mxu0 %vm1223_vm4, %v1075_v21  ;;  %v1712_v21 = vld [vmem:[#allocation18] sm:$0xff] }
 0x391   : > { %2983 = vmatprep.mubr.msk.f32.mxu0 %vm3788_vm0, %v3787_v3  ;;  %v3104_v23 = vpack.c.bf16 %v1713_v22, %v1712_v21 }
 0x45f   : > { %v1537_v50 = vpop.f32.mrb[6].mxu0 }
 0x460   : > { %v2964_v51 = vpop.f32.mrb[7].mxu0  ;;  %2974 = vmatmul.mubr.msk.f32.vlgmr.msra.gmra.mrb[6].mxu1 %vm1149_vm3, %v1537_v50 }
 0x461   : > { %2988 = vmatprep.mubr.msk.f32.mxu1 %vm3788_vm0, %v3787_v3  ;;  %2987 = vmatpush3.msra.mxu1 %v4450_v54 }
 0x462   : > { %3097 = vmatprep.subr.bf16.mxu1 %v3789_v13 }
 0x463   : > { %v1683_v52 = vpop.f32.mrb[8].mxu0 }
 0x464   : > { %v2980_v53 = vpop.f32.mrb[9].mxu0  ;;  %2989 = vmatmul.mubr.msk.f32.vlgmr.msra.gmra.mrb[8].mxu1 %vm1005_vm1, %v4363_v6 }
 0x465   : > { %3010 = vmatprep.mubr.msk.f32.mxu1 %vm3788_vm0, %v3787_v3  ;;  %3099 = vmatpush3.bf16.msra.mxu1 %v3098_v57 }
 0x466   : > { %3100 = vmatprep.subr.bf16.mxu1 %v3789_v13 }
 0x469   : > { %3102 = vmatpush3.bf16.msra.mxu1 %v3101_v60  ;;  %v1718_v60 = vld [vmem:[#allocation21 + $0x8] sm:$0xff] }
 0x46a   : > { %3109 = vmatprep.subr.bf16.mxu1 %v3789_v13  ;;  %v3122_v63 = vpack.c.bf16 %v1718_v60, %v1717_v59 }
 0x533   : > { %v1610_v2 = vpop.f32.mrb[6].mxu1 }
 0x534   : > { %v1684_v4 = vadd.f32 %v1683_v52, %v1610_v2  ;;  %v2975_v7 = vpop.f32.mrb[7].mxu1 }
 0x536   : > { %v1693_v9 = vadd.f32 %v2827_v1, %v1684_v4  ;;  %v1720_v1 = vld [vmem:[#allocation21 + $0x18] sm:$0xff] }
 0x537   : > { %v1864_v26 = vpop.f32.mrb[8].mxu1  ;;  %v3125_v2 = vpack.c.bf16 %v1720_v1, %v1719_v0 }
 0x538   : > { %3309 = vtanh.f32 %v1693_v9  ;;  %v2990_v27 = vpop.f32.mrb[9].mxu1  ;;  %v2407_v9 = vld [vmem:[%s4670_s26] sm:$0xff] }
 0x539   : > { %3311 = vrcp.f32 %v1467_v8 }
 0x542   : > { %v3310_v10 = vpop.eup %3309 }
 0x543   : > { %v1695_v11 = vsub.f32 %v4361_v5, %v3310_v10  ;;  %v3312_v12 = vpop.eup %3311  ;;  %v3095_v5 = vpack.c.bf16 %v1706_v20, %v1705_v19  ;;  %v2842_v19 = vld [vmem:[#allocation24] ss:$0 sm:$0xff] }
 0x545   : > { %v1696_v16 = vmul.f32 %v3312_v12, %v1695_v11  ;;  %v2409_v12 = vld [vmem:[%s4670_s26 + $0x10] sm:$0xff] }
 0x547   : > { %v1697_v17 = vadd.f32 %v3310_v10, %v1696_v16  ;;  %v2408_v10 = vld [vmem:[%s4670_s26 + $0x8] sm:$0xff] }
 0x548   : > { %v3128_v11 = vpack.c.bf16 %v2408_v10, %v2407_v9 }
 0x549   : > { %1698 = vst.msk [vmem:[%s4474_s9] sm:$0xff] %vm1149_vm3, %v1697_v17  ;;  %2982 = vmatpush3.msra.mxu0 %v1697_v17 }
 0x54a   : > { %2984 = vmatmul.mubr.msk.f32.vlgmr.msra.gmra.mrb[10].mxu0 %vm1005_vm1, %v4363_v6  ;;  %3091 = vmatprep.subr.bf16.mxu0 %v3789_v13 }
 0x54b   : > { %3093 = vmatpush3.bf16.msra.mxu0 %v3092_v18  ;;  %2999 = vmatprep.mubr.msk.f32.mxu0 %vm3788_vm0, %v3787_v3 }
 0x54c   : > { %3094 = vmatprep.subr.bf16.mxu0 %v3789_v13 }
 0x54f   : > { %3096 = vmatpush3.bf16.msra.mxu0 %v3095_v5 }
 0x550   : > { %3103 = vmatprep.subr.bf16.mxu0 %v3789_v13 }
 0x552   : > { %3000 = vmatmul.mubr.msk.f32.vlgmr.msra.gmra.mrb[12].mxu0 %vm1149_vm3, %v1864_v26 }
 0x553   : > { %3105 = vmatpush3.bf16.msra.mxu0 %v3104_v23  ;;  %3021 = vmatprep.mubr.msk.f32.mxu0 %vm3788_vm0, %v3787_v3 }
 0x554   : > { %3106 = vmatprep.subr.bf16.mxu0 %v3789_v13 }
 0x557   : > { %3108 = vmatpush3.bf16.msra.mxu0 %v3107_v28  ;;  %v2844_v28 = vld [vmem:[#allocation2] ss:$0 sm:$0xff] }
 0x558   : > { %3035 = vmatprep.subr.mxu0 %v3787_v3 }
 0x55a   : > { %3022 = vmatmul.mubr.msk.f32.vlgmr.msra.gmra.mrb[14].mxu0 %vm1149_vm3, %v1864_v26 }
 0x55b   : > { %3037 = vmatprep.mubr.msk.f32.mxu0 %vm3788_vm0, %v3787_v3 }
 0x61d   : > { %v1794_v34 = vpop.f32.mrb[10].mxu0 }
 0x61e   : > { %v2985_v35 = vpop.f32.mrb[11].mxu0  ;;  %3011 = vmatmul.mubr.msk.f32.vlgmr.msra.gmra.mrb[10].mxu1 %vm1149_vm3, %v1794_v34 }
 0x61f   : > { %3111 = vmatpush3.bf16.msra.mxu1 %v3110_v31  ;;  %3032 = vmatprep.mubr.msk.f32.mxu1 %vm3788_vm0, %v3787_v3 }
 0x620   : > { %3112 = vmatprep.subr.bf16.mxu1 %v3789_v13 }
 0x623   : > { %3114 = vmatpush3.bf16.msra.mxu1 %v3113_v36 }
 0x624   : > { %3115 = vmatprep.subr.bf16.mxu1 %v3789_v13 }
 0x625   : > { %v1937_v37 = vpop.f32.mrb[12].mxu0 }
 0x626   : > { %3033 = vmatmul.mubr.msk.f32.vlgmr.msra.gmra.mrb[12].mxu1 %vm1149_vm3, %v1794_v34  ;;  %v3001_v38 = vpop.f32.mrb[13].mxu0 }
 0x627   : > { %3048 = vmatprep.mubr.msk.f32.mxu1 %vm3788_vm0, %v3787_v3  ;;  %3117 = vmatpush3.bf16.msra.mxu1 %v3116_v44 }
 0x628   : > { %3118 = vmatprep.subr.bf16.mxu1 %v3789_v13 }
 0x62b   : > { %3120 = vmatpush3.bf16.msra.mxu1 %v3119_v46 }
 0x62c   : > { %3127 = vmatprep.subr.bf16.mxu1 %v3789_v13 }
 0x62d   : > { %v2093_v39 = vpop.f32.mrb[14].mxu0 }
 0x62e   : > { %v3023_v40 = vpop.f32.mrb[15].mxu0 }
 0x6f1   : > { %v2010_v48 = vpop.f32.mrb[10].mxu1 }
 0x6f2   : > { %v2011_v49 = vadd.f32 %v2010_v48, %v1937_v37  ;;  %v3012_v50 = vpop.f32.mrb[11].mxu1 }
 0x6f4   : > { %v2020_v51 = vadd.f32 %v2833_v47, %v2011_v49 }
 0x6f6   : > { %v2834_v52 = vmul.f32 -1.442695, %v2020_v51 }
 0x6f8   : > { %3313 = vpow2.f32 %v2834_v52 }
 0x6f9   : > { %v2163_v53 = vpop.f32.mrb[12].mxu1 }
 0x6fa   : > { %v2164_v55 = vadd.f32 %v2163_v53, %v2093_v39  ;;  %v3034_v56 = vpop.f32.mrb[13].mxu1 }
 0x6fc   : > { %v2173_v16 = vadd.f32 %v2837_v15, %v2164_v55 }
 0x6fe   : > { %v2838_v17 = vmul.f32 -1.442695, %v2173_v16 }
 0x702   : > { %v3314_v57 = vpop.eup %3313 }
 0x703   : > { %v2024_v58 = vadd.f32 1.0, %v3314_v57 }
 0x705   : > { %3315 = vrcp.f32 %v2024_v58 }
 0x706   : > { %3317 = vpow2.f32 %v2838_v17 }
 0x70f   : > { %v3316_v61 = vpop.eup %3315 }
 0x710   : > { %v2180_v62 = vmul.f32 %v3316_v61, %v4450_v54  ;;  %v3318_v18 = vpop.eup %3317 }
 0x711   : > { %v2177_v22 = vadd.f32 1.0, %v3318_v18 }
 0x712   : > { %3036 = vmatpush3.msra.mxu0 %v2180_v62 }
 0x713   : > { %3038 = vmatmul.mubr.msk.f32.vlgmr.msra.gmra.mrb[16].mxu0 %vm1005_vm1, %v4363_v6  ;;  %3121 = vmatprep.subr.bf16.mxu0 %v3789_v13 }
 0x714   : > { %3123 = vmatpush3.bf16.msra.mxu0 %v3122_v63  ;;  %3059 = vmatprep.mubr.msk.f32.mxu0 %vm3788_vm0, %v3787_v3 }
 0x715   : > { %3124 = vmatprep.subr.bf16.mxu0 %v3789_v13 }
 0x718   : > { %3126 = vmatpush3.bf16.msra.mxu0 %v3125_v2 }
 0x71b   : > { %3060 = vmatmul.mubr.msk.f32.vlgmr.msra.gmra.mrb[18].mxu0 %vm1149_vm3, %v1794_v34 }
 0x7e6   : > { %v2247_v4 = vpop.f32.mrb[16].mxu0 }
 0x7e7   : > { %3049 = vmatmul.mubr.msk.f32.vlgmr.msra.gmra.mrb[14].mxu1 %vm1149_vm3, %v2247_v4  ;;  %v3039_v7 = vpop.f32.mrb[17].mxu0 }
 0x7e8   : > { %3070 = vmatprep.mubr.msk.f32.mxu1 %vm3788_vm0, %v3787_v3  ;;  %3129 = vmatpush3.bf16.msra.mxu1 %v3128_v11  ;;  %v2410_v3 = vld [vmem:[%s4670_s26 + $0x18] sm:$0xff] }
 0x7e9   : > { %3130 = vmatprep.subr.bf16.mxu1 %v3789_v13  ;;  %v3131_v14 = vpack.c.bf16 %v2410_v3, %v2409_v12 }
 0x7ec   : > { %3132 = vmatpush3.bf16.msra.mxu1 %v3131_v14 }
 0x7ee   : > { %v2390_v6 = vpop.f32.mrb[18].mxu0 }
 0x7ef   : > { %v3061_v8 = vpop.f32.mrb[19].mxu0 }
 0x8ba   : > { %v2320_v20 = vpop.f32.mrb[14].mxu1 }
 0x8bb   : > { %v2391_v5 = vadd.f32 %v2390_v6, %v2320_v20  ;;  %v3050_v21 = vpop.f32.mrb[15].mxu1 }
 0x8bd   : > { %v2400_v23 = vadd.f32 %v2842_v19, %v2391_v5 }
 0x8bf   : > { %3319 = vtanh.f32 %v2400_v23 }
 0x8c0   : > { %3321 = vrcp.f32 %v2177_v22 }
 0x8c9   : > { %v3320_v24 = vpop.eup %3319 }
 0x8ca   : > { %v2402_v13 = vsub.f32 %v4450_v54, %v3320_v24  ;;  %v3322_v25 = vpop.eup %3321  ;;  %v2537_v54 = vld [vmem:[%s4474_s9] sm:$0xff] (%p4673_p8) }
 0x8cb   : > { %2538 = vst [vmem:[%s2507_s0] sm:$0xff] (%p4673_p8), %v2537_v54 }
 0x8cc   : > { %v2403_v26 = vmul.f32 %v3322_v25, %v2402_v13 }
 0x8ce   : > { %v2404_v27 = vadd.f32 %v3320_v24, %v2403_v26 }
 0x8d0   : > { %2843 = vst.msk [vmem:[%s4474_s9 + $0x8] sm:$0xff] %vm1149_vm3, %v2404_v27  ;;  %3071 = vmatmul.mubr.msk.f32.vlgmr.msra.gmra.mrb[16].mxu1 %vm1149_vm3, %v2404_v27 }
 0x8d7   : > { %v2539_v32 = vld [vmem:[%s4474_s9 + $0x8] sm:$0xff] (%p4673_p8) }
 0x8d8   : > { %2540 = vst [vmem:[%s2507_s0 + $0x10] sm:$0xff] (%p4673_p8), %v2539_v32 }
 0x9a0   : > { %2505 = sbr.rel (!%p4673_p8) target bundleno = 2471 (0x9a7), region = 214 }
 0x9a3   : > { %v2487_v29 = vpop.f32.mrb[16].mxu1 }
 0x9a4   : > { %v2488_v30 = vadd.f32 %v2844_v28, %v2487_v29  ;;  %v3072_v31 = vpop.f32.mrb[17].mxu1 }
 0x9a6   : > { %2491 = vst.msk [vmem:[%s983_s2] sm:$0xff] %vm1223_vm4, %v2488_v30 }
 0x9a7 PF: > { %s4675_s6 = sld [smem:[#allocation35_spill]]  ;;  %s4676_s25 = sld [smem:[#allocation36_spill]] }
 0x9a8   : > { %s4677_s27 = smov %s3765_s28 }
 0x9ad   : > { %p42_p9 = scmp.ge.s32.totalorder %s4675_s6, 4   ;;  %s4678_s28 = smov %s4676_s25 }
 0x9af   :  { %44 = sbr.rel (!%p42_p9) target bundleno = 27 (0x1b), region = 297 }
 0x9b6   :  { %2563 = vsyncpa [#allocation5], 1 }
 0x9b7   :  { %2565 = vsyncpa [#allocation5 + $0x1], 1 }
 0x9b8   :  { %2566 = vsyncpa [#allocation7], 1 }
 0x9b9   :  { %2567 = vsyncpa [#allocation10], 1 }
 0x9ba   :  { %2568 = vsyncpa [#allocation13], 1 }
 0x9bb   :  { %2569 = vsyncpa [#allocation16], 1 }
 0x9bc   :  { %2570 = vsyncpa [#allocation19], 1 }
 0x9bd   :  { %2571 = vsyncpa [#allocation22], 1 }
 0x9be   :  { %2572 = vsyncpa [#allocation25], 1 }

</bundles_post_ra>
